<compile_context>
chip_gen: v7x
topology: tpu7x:2x2x1
jax: 0.10.0
libtpu: 0.0.40
codegen_flags: <defaults>
</compile_context>

<pallas_src>
import math
import functools

import jax
import jax.numpy as jnp
from jax import lax
from jax.experimental import pallas as pl
from jax.experimental.pallas import tpu as pltpu

_LOG2PI = math.log(2.0 * math.pi)

# packed output-slab column layout (lane-dense, padded to 16 lanes)
_SLAB_W = 16
_C_YPRED, _C_UEST, _C_LOGPOST, _C_SIGMA, _C_TREP, _C_MU, _C_LOGPI0 = 0, 1, 2, 3, 4, 5, 6


# ---------------------------------------------------------------------------
# Kernel 1: fully fused per-row forward pass -> one packed slab + (C, N) stats
# ---------------------------------------------------------------------------
def _fused_row_kernel(x_ref, s_ref, y_ref, eps_ref,
                      dw1, db1, dw2, db2,
                      qw1, qb1, qw2, qb2, qw3, qb3, w4m, b4m, w4s, b4s,
                      piw, wmT, bmT, wsT, bsT,
                      q1w, q1b, q2w, q2b,
                      slab_ref, meanT_ref, invsigT_ref, logsigT_ref,
                      *, n_comp, degree, knots):
    f32 = jnp.float32

    # ---- density feature extractor: Linear(x_dim,50)+ReLU, Linear(50,50)+ReLU
    h = jnp.maximum(jnp.dot(x_ref[...], dw1[...], preferred_element_type=f32) + db1[...], 0.0)
    hidden = jnp.maximum(jnp.dot(h, dw2[...], preferred_element_type=f32) + db2[...], 0.0)

    # ---- merged q_phi_mu / q_phi_log_sigma: one 128-lane block-diagonal MLP chain
    sv = s_ref[...]                                     # (TM, 1)
    yv = y_ref[...]                                     # (TM, 1)
    w1 = qw1[...]                                       # (2, 2H) rows = [s, y]
    q = jnp.maximum(sv * w1[0:1, :] + yv * w1[1:2, :] + qb1[...], 0.0)
    q = jnp.maximum(jnp.dot(q, qw2[...], preferred_element_type=f32) + qb2[...], 0.0)
    q = jnp.maximum(jnp.dot(q, qw3[...], preferred_element_type=f32) + qb3[...], 0.0)
    mu = jnp.dot(q, w4m[...], preferred_element_type=f32) + b4m[...]          # (TM, 1)
    log_sigma = jnp.dot(q, w4s[...], preferred_element_type=f32) + b4s[...]   # (TM, 1)
    sigma = jnp.exp(log_sigma)

    eps = eps_ref[...]
    t_rep = mu + eps * sigma                            # reparameterization
    # z = (t_rep - mu)/sigma == eps exactly -> no divide needed
    log_post = -0.5 * eps * eps - log_sigma - 0.5 * _LOG2PI

    # ---- MD head mixture weights: exact log-softmax (row layout, into slab)
    logits = jnp.dot(hidden, piw[...], preferred_element_type=f32)            # (TM, C)
    logits = logits - jnp.max(logits, axis=1, keepdims=True)
    log_pi = logits - jnp.log(jnp.sum(jnp.exp(logits), axis=1, keepdims=True))

    # ---- MD head mean / log_sigma / inv_sigma directly in transposed (C, TM)
    # lane-dense layout via A @ B^T (contracting both last dims; no transpose op)
    dn = (((1,), (1,)), ((), ()))
    meanT = lax.dot_general(wmT[...], hidden, dn, preferred_element_type=f32) + bmT[...]
    lsigT = lax.dot_general(wsT[...], hidden, dn, preferred_element_type=f32) + bsT[...]
    meanT_ref[...] = meanT
    logsigT_ref[...] = lsigT
    invsigT_ref[...] = jnp.exp(-lsigT)

    # ---- Q head: two Dynamic_FC layers, decomposed into d per-basis matmuls
    # (lane-aligned: no concatenation of 50-wide chunks at odd lane offsets)
    basis_cols = [jnp.ones_like(t_rep)]
    for pw in range(1, degree + 1):
        basis_cols.append(t_rep ** pw)
    for kn in knots:
        basis_cols.append(jnp.maximum(t_rep - kn, 0.0) ** degree)
    d = len(basis_cols)

    def dyn_fc(feat, w_ref, b_ref):
        out = basis_cols[0] * b_ref[0:1, :]
        for k in range(1, d):
            out = out + basis_cols[k] * b_ref[k:k + 1, :]
        for k in range(d):
            out = out + jnp.dot(basis_cols[k] * feat, w_ref[k],
                                preferred_element_type=f32)
        return out

    h1 = jnp.maximum(dyn_fc(hidden, q1w, q1b), 0.0)     # (TM, 50)
    y_pred = dyn_fc(h1, q2w, q2b)                       # (TM, 1)

    # ---- pack all per-row results into ONE lane-dense slab (single output DMA)
    slab_ref[...] = jnp.zeros_like(slab_ref)
    slab_ref[:, _C_YPRED:_C_YPRED + 1] = y_pred
    slab_ref[:, _C_UEST:_C_UEST + 1] = sv - t_rep
    slab_ref[:, _C_LOGPOST:_C_LOGPOST + 1] = log_post
    slab_ref[:, _C_SIGMA:_C_SIGMA + 1] = sigma
    slab_ref[:, _C_TREP:_C_TREP + 1] = t_rep
    slab_ref[:, _C_MU:_C_MU + 1] = mu
    slab_ref[:, _C_LOGPI0:_C_LOGPI0 + n_comp] = log_pi


# ---------------------------------------------------------------------------
# Kernel 2: O(N^2) mixture prior / log_prior + t_error, (row, column) tiled
# ---------------------------------------------------------------------------
def _mixture_kernel(slab_ref, meanT_ref, invsigT_ref, logsigT_ref, t_ref,
                    prior_ref, logprior_ref, terr_ref,
                    *, n_comp, n_valid, n_total, col_tile):
    j = pl.program_id(1)

    t_rep = slab_ref[:, _C_TREP:_C_TREP + 1]                    # (TM, 1)
    mu = slab_ref[:, _C_MU:_C_MU + 1]                           # (TM, 1)
    log_pi = slab_ref[:, _C_LOGPI0:_C_LOGPI0 + n_comp]          # (TM, C)

    # mixture log-prior over this (TM, TN) tile with a stable logsumexp;
    # log_sigma / inv_sigma come precomputed from kernel 1 (no per-tile log/recip)
    log_terms = []
    for c in range(n_comp):
        zc = (t_rep - meanT_ref[c:c + 1, :]) * invsigT_ref[c:c + 1, :]   # (TM, TN)
        log_terms.append(log_pi[:, c:c + 1] - 0.5 * zc * zc
                         - logsigT_ref[c:c + 1, :] - 0.5 * _LOG2PI)
    m = log_terms[0]
    for lt in log_terms[1:]:
        m = jnp.maximum(m, lt)
    ssum = jnp.zeros_like(m)
    for lt in log_terms:
        ssum = ssum + jnp.exp(lt - m)
    log_prior = m + jnp.log(ssum)
    logprior_ref[...] = log_prior
    prior_ref[...] = jnp.exp(log_prior)

    # per-row partial sum of the (N, N) broadcast (t - mu)^2, accumulated across
    # the "arbitrary" column axis; finalized (scaled) on the last column tile.
    diff = t_ref[...] - mu                                       # (TM, TN)
    sq = diff * diff
    if n_valid != n_total:
        col = j * col_tile + lax.broadcasted_iota(jnp.int32, sq.shape, 1)
        sq = jnp.where(col < n_valid, sq, 0.0)
    partial = jnp.sum(sq, axis=1, keepdims=True)

    @pl.when(j == 0)
    def _():
        terr_ref[...] = jnp.zeros_like(terr_ref)

    terr_ref[...] += partial

    @pl.when(j == pl.num_programs(1) - 1)
    def _():
        terr_ref[...] = terr_ref[...] * (1.0 / n_valid)


# ---------------------------------------------------------------------------
# Parameter construction (deterministic, synthetic — mirrors __init__ shapes),
# fused/reshaped once for the kernels.
# ---------------------------------------------------------------------------
def _block_diag(a, b):
    top = jnp.concatenate([a, jnp.zeros((a.shape[0], b.shape[1]), a.dtype)], axis=1)
    bot = jnp.concatenate([jnp.zeros((b.shape[0], a.shape[1]), b.dtype), b], axis=1)
    return jnp.concatenate([top, bot], axis=0)


def prepare_fused_params(raw, n_comp):
    C = n_comp
    qm, ql = raw["q_mu"], raw["q_ls"]
    return {
        "dw1": raw["dw1"], "db1": raw["db1"], "dw2": raw["dw2"], "db2": raw["db2"],
        # two 64-wide q_phi MLPs -> one 128-wide block-diagonal chain
        "qw1": jnp.concatenate([qm[0], ql[0]], axis=1),
        "qb1": jnp.concatenate([qm[1], ql[1]], axis=1),
        "qw2": _block_diag(qm[2], ql[2]),
        "qb2": jnp.concatenate([qm[3], ql[3]], axis=1),
        "qw3": _block_diag(qm[4], ql[4]),
        "qb3": jnp.concatenate([qm[5], ql[5]], axis=1),
        "qw4_mu": jnp.concatenate([qm[6], jnp.zeros_like(ql[6])], axis=0),
        "qb4_mu": qm[7],
        "qw4_ls": jnp.concatenate([jnp.zeros_like(qm[6]), ql[6]], axis=0),
        "qb4_ls": ql[7],
        # MD head: pi projection + pre-transposed mean/sigma halves (for (C,N) out)
        "md_piw": raw["md_piw"],
        "md_wmT": raw["md_w"][:, :C].T, "md_bmT": raw["md_b"][:, :C].T,
        "md_wsT": raw["md_w"][:, C:].T, "md_bsT": raw["md_b"][:, C:].T,
        # Dynamic_FC weights kept as (d, ind, outd) / (d, outd) for the per-basis
        # matmul decomposition
        "q1w": raw["Q1_w"], "q1b": raw["Q1_b"],
        "q2w": raw["Q2_w"], "q2b": raw["Q2_b"],
    }


def init_params(key, x_dim, t_dim=1, n_comp=3, hidden_dim=64, degree=2, knots=(0.33, 0.66)):
    assert t_dim == 1, "fused kernel assumes t_dim == 1 (the module default)"
    ks = iter(jax.random.split(key, 64))
    u = lambda shp, lo=-0.1, hi=0.1: jax.random.uniform(next(ks), shp, jnp.float32, lo, hi)
    d = degree + 1 + len(knots)
    raw = {
        "dw1": u((x_dim, 50)), "db1": u((1, 50)),
        "dw2": u((50, 50)), "db2": u((1, 50)),
        "md_w": u((50, 2 * n_comp), 0.0, 1.0),
        "md_piw": u((50, n_comp), 0.0, 1.0),
        "md_b": u((1, 2 * n_comp), 0.0, 1.0),
        "Q1_w": u((d, 50, 50), 0.0, 1.0), "Q1_b": u((d, 50), 0.0, 1.0),
        "Q2_w": u((d, 50, 1), 0.0, 1.0), "Q2_b": u((d, 1), 0.0, 1.0),
    }

    def mlp():
        return [u((t_dim + 1, hidden_dim)), u((1, hidden_dim)),
                u((hidden_dim, hidden_dim)), u((1, hidden_dim)),
                u((hidden_dim, hidden_dim)), u((1, hidden_dim)),
                u((hidden_dim, t_dim)), u((1, t_dim))]
    raw["q_mu"], raw["q_ls"] = mlp(), mlp()
    return prepare_fused_params(raw, n_comp=n_comp)


# ---------------------------------------------------------------------------
# Tiling helpers
# ---------------------------------------------------------------------------
def _round_up(a, b):
    return (a + b - 1) // b * b


def _row_tile_k1(n):
    # tm must be a multiple of 128 or equal to n_pad (the (C, tm) transposed
    # output blocks need 128-multiple / full-width lanes).
    if n <= 128:
        tm = _round_up(max(n, 1), 8)
        return tm, tm
    n_pad = _round_up(n, 128)
    tm = 128                                   # >=2 steps -> v7x's 2nd TC gets work
    for cand in (512, 256):                    # bigger tiles amortize per-step cost
        if n_pad % cand == 0 and n_pad // cand >= 2:
            tm = cand
            break
    return tm, n_pad


def _col_tile_k2(n_pad):
    if n_pad <= 128:
        return n_pad
    for cand in (1024, 512, 256, 128):
        if n_pad % cand == 0:
            return cand
    return 128


# ---------------------------------------------------------------------------
# VF_VCNet forward (mode='train')
# ---------------------------------------------------------------------------
def _forward_impl(params, s, t, x, y, key, n_comp=3, degree=2, knots=(0.33, 0.66)):
    p = params
    n, x_dim = x.shape
    C = n_comp
    assert 6 + C <= _SLAB_W

    s2 = s.reshape(n, 1).astype(jnp.float32)
    y2 = y.reshape(n, 1).astype(jnp.float32)
    # TODO(synk): reparameterization noise (torch.distributions.Normal.sample) is
    # drawn with jax.random outside the kernel.
    eps = jax.random.normal(key, (n, 1), jnp.float32)

    tm1, n_pad = _row_tile_k1(n)
    grid1 = (n_pad // tm1,)

    def pad_rows(a):
        return a if n_pad == n else jnp.pad(a, ((0, n_pad - n), (0, 0)))

    xp = pad_rows(x.astype(jnp.float32))
    sp, yp, ep = pad_rows(s2), pad_rows(y2), pad_rows(eps)

    weights = (p["dw1"], p["db1"], p["dw2"], p["db2"],
               p["qw1"], p["qb1"], p["qw2"], p["qb2"], p["qw3"], p["qb3"],
               p["qw4_mu"], p["qb4_mu"], p["qw4_ls"], p["qb4_ls"],
               p["md_piw"], p["md_wmT"], p["md_bmT"], p["md_wsT"], p["md_bsT"],
               p["q1w"], p["q1b"], p["q2w"], p["q2b"])

    def row_spec(c):
        return pl.BlockSpec((tm1, c), lambda i: (i, 0))

    def full_spec(a):
        return pl.BlockSpec(a.shape, lambda *_: (0,) * a.ndim)

    comp_t_spec = pl.BlockSpec((C, tm1), lambda i: (0, i))

    k1 = functools.partial(_fused_row_kernel, n_comp=C, degree=degree, knots=tuple(knots))
    slab, mean_t, invsig_t, logsig_t = pl.pallas_call(
        k1,
        grid=grid1,
        in_specs=[row_spec(x_dim), row_spec(1), row_spec(1), row_spec(1)]
                 + [full_spec(w) for w in weights],
        out_specs=(pl.BlockSpec((tm1, _SLAB_W), lambda i: (i, 0)),
                   comp_t_spec, comp_t_spec, comp_t_spec),
        out_shape=(jax.ShapeDtypeStruct((n_pad, _SLAB_W), jnp.float32),
                   jax.ShapeDtypeStruct((C, n_pad), jnp.float32),
                   jax.ShapeDtypeStruct((C, n_pad), jnp.float32),
                   jax.ShapeDtypeStruct((C, n_pad), jnp.float32)),
        compiler_params=pltpu.CompilerParams(dimension_semantics=("parallel",)),
    )(xp, sp, yp, ep, *weights)

    # ---- kernel 2: (row, column)-tiled mixture prior / log_prior / t_error
    t_row = t.reshape(1, n).astype(jnp.float32)
    if n_pad != n:
        t_row = jnp.pad(t_row, ((0, 0), (0, n_pad - n)))

    tm2 = n_pad if n_pad <= 128 else 128
    tn = _col_tile_k2(n_pad)
    grid2 = (n_pad // tm2, n_pad // tn)

    k2 = functools.partial(_mixture_kernel, n_comp=C, n_valid=n, n_total=n_pad, col_tile=tn)
    prior_p, log_prior_p, terr_rows = pl.pallas_call(
        k2,
        grid=grid2,
        in_specs=[pl.BlockSpec((tm2, _SLAB_W), lambda i, j: (i, 0)),
                  pl.BlockSpec((C, tn), lambda i, j: (0, j)),
                  pl.BlockSpec((C, tn), lambda i, j: (0, j)),
                  pl.BlockSpec((C, tn), lambda i, j: (0, j)),
                  pl.BlockSpec((1, tn), lambda i, j: (0, j))],
        out_specs=(pl.BlockSpec((tm2, tn), lambda i, j: (i, j)),
                   pl.BlockSpec((tm2, tn), lambda i, j: (i, j)),
                   pl.BlockSpec((tm2, 1), lambda i, j: (i, 0))),
        out_shape=(jax.ShapeDtypeStruct((n_pad, n_pad), jnp.float32),
                   jax.ShapeDtypeStruct((n_pad, n_pad), jnp.float32),
                   jax.ShapeDtypeStruct((n_pad, 1), jnp.float32)),
        compiler_params=pltpu.CompilerParams(
            dimension_semantics=("parallel", "arbitrary")),
    )(slab, mean_t, invsig_t, logsig_t, t_row)

    t_error_posterior = jnp.mean(terr_rows[:n, 0])

    return {
        "y_pred": slab[:n, _C_YPRED:_C_YPRED + 1],
        "log_prior": log_prior_p[:n, :n],
        "log_posterior": slab[:n, _C_LOGPOST:_C_LOGPOST + 1],
        "u_est": slab[:n, _C_UEST:_C_UEST + 1],
        "t_error_posterior": t_error_posterior,
        "posterior_sigma": slab[:n, _C_SIGMA:_C_SIGMA + 1],
        "t_repara": slab[:n, _C_TREP:_C_TREP + 1],
        "prior": prior_p[:n, :n],
    }


vf_vcnet_forward = jax.jit(_forward_impl, static_argnames=("n_comp", "degree", "knots"))


if __name__ == "__main__":
    N, X_DIM = 8, 16
    key = jax.random.PRNGKey(0)
    k_par, k_s, k_t, k_x, k_y, k_eps = jax.random.split(key, 6)

    params = init_params(k_par, x_dim=X_DIM)

    s = jax.random.uniform(k_s, (N,), jnp.float32)          # treatment in [0, 1]
    t = jax.random.uniform(k_t, (N,), jnp.float32)
    x = jax.random.normal(k_x, (N, X_DIM), jnp.float32)
    y = jax.random.normal(k_y, (N,), jnp.float32)

    out = vf_vcnet_forward(params, s, t, x, y, k_eps)
    jax.block_until_ready(out)

    assert out["y_pred"].shape == (N, 1)
    assert out["prior"].shape == (N, N)
    assert out["log_prior"].shape == (N, N)
    assert out["log_posterior"].shape == (N, 1)
    assert out["u_est"].shape == (N, 1)
    assert out["t_error_posterior"].shape == ()
    assert bool(jnp.isfinite(out["y_pred"]).all())
    assert bool(jnp.isfinite(out["log_prior"]).all())
    assert bool(jnp.isfinite(out["prior"]).all())
    print("KERNEL_OK")
</pallas_src>

<mosaic_0001>
module attributes {stable_mosaic.version = 11 : i64} {
  func.func @_mixture_kernel(%arg0: i32, %arg1: i32, %arg2: memref<8x16xf32, #tpu.memory_space<vmem>>, %arg3: memref<3x8xf32, #tpu.memory_space<vmem>>, %arg4: memref<3x8xf32, #tpu.memory_space<vmem>>, %arg5: memref<3x8xf32, #tpu.memory_space<vmem>>, %arg6: memref<1x8xf32, #tpu.memory_space<vmem>>, %arg7: memref<8x8xf32, #tpu.memory_space<vmem>>, %arg8: memref<8x8xf32, #tpu.memory_space<vmem>>, %arg9: memref<8x1xf32, #tpu.memory_space<vmem>>) attributes {dimension_semantics = [#tpu.dimension_semantics<parallel>, #tpu.dimension_semantics<arbitrary>], iteration_bounds = array<i64: 1, 1>, scalar_prefetch = 0 : i64, scratch_operands = 0 : i64, tpu.core_type = #tpu.core_type<tc>, window_params = [{transform_indices = @transform_0, window_bounds = array<i64: 8, 16>}, {transform_indices = @transform_1, window_bounds = array<i64: 3, 8>}, {transform_indices = @transform_2, window_bounds = array<i64: 3, 8>}, {transform_indices = @transform_3, window_bounds = array<i64: 3, 8>}, {transform_indices = @transform_4, window_bounds = array<i64: 1, 8>}, {transform_indices = @transform_5, window_bounds = array<i64: 8, 8>}, {transform_indices = @transform_6, window_bounds = array<i64: 8, 8>}, {transform_indices = @transform_7, window_bounds = array<i64: 8, 1>}]} {
    %c0 = arith.constant 0 : index
    %c4 = arith.constant 4 : index
    %0 = vector.load %arg2[%c0, %c4] : memref<8x16xf32, #tpu.memory_space<vmem>>, vector<8x1xf32>
    %c0_0 = arith.constant 0 : index
    %c5 = arith.constant 5 : index
    %1 = vector.load %arg2[%c0_0, %c5] : memref<8x16xf32, #tpu.memory_space<vmem>>, vector<8x1xf32>
    %c0_1 = arith.constant 0 : index
    %c6 = arith.constant 6 : index
    %2 = vector.load %arg2[%c0_1, %c6] : memref<8x16xf32, #tpu.memory_space<vmem>>, vector<8x3xf32>
    %c0_2 = arith.constant 0 : index
    %c0_3 = arith.constant 0 : index
    %3 = vector.load %arg3[%c0_2, %c0_3] : memref<3x8xf32, #tpu.memory_space<vmem>>, vector<1x8xf32>
    %4 = vector.broadcast %0 : vector<8x1xf32> to vector<8x8xf32>
    %5 = vector.broadcast %3 : vector<1x8xf32> to vector<8x8xf32>
    %6 = arith.subf %4, %5 : vector<8x8xf32>
    %c0_4 = arith.constant 0 : index
    %c0_5 = arith.constant 0 : index
    %7 = vector.load %arg4[%c0_4, %c0_5] : memref<3x8xf32, #tpu.memory_space<vmem>>, vector<1x8xf32>
    %8 = vector.broadcast %7 : vector<1x8xf32> to vector<8x8xf32>
    %9 = arith.mulf %6, %8 : vector<8x8xf32>
    %10 = vector.extract_strided_slice %2 {offsets = [0, 0], sizes = [8, 1], strides = [1, 1]} : vector<8x3xf32> to vector<8x1xf32>
    %cst = arith.constant 5.000000e-01 : f32
    %11 = vector.broadcast %cst : f32 to vector<8x8xf32>
    %12 = arith.mulf %11, %9 : vector<8x8xf32>
    %13 = arith.mulf %12, %9 : vector<8x8xf32>
    %14 = vector.broadcast %10 : vector<8x1xf32> to vector<8x8xf32>
    %15 = arith.subf %14, %13 : vector<8x8xf32>
    %c0_6 = arith.constant 0 : index
    %c0_7 = arith.constant 0 : index
    %16 = vector.load %arg5[%c0_6, %c0_7] : memref<3x8xf32, #tpu.memory_space<vmem>>, vector<1x8xf32>
    %17 = vector.broadcast %16 : vector<1x8xf32> to vector<8x8xf32>
    %18 = arith.subf %15, %17 : vector<8x8xf32>
    %cst_8 = arith.constant 0.918938517 : f32
    %19 = vector.broadcast %cst_8 : f32 to vector<8x8xf32>
    %20 = arith.subf %18, %19 : vector<8x8xf32>
    %c1 = arith.constant 1 : index
    %c0_9 = arith.constant 0 : index
    %21 = vector.load %arg3[%c1, %c0_9] : memref<3x8xf32, #tpu.memory_space<vmem>>, vector<1x8xf32>
    %22 = vector.broadcast %0 : vector<8x1xf32> to vector<8x8xf32>
    %23 = vector.broadcast %21 : vector<1x8xf32> to vector<8x8xf32>
    %24 = arith.subf %22, %23 : vector<8x8xf32>
    %c1_10 = arith.constant 1 : index
    %c0_11 = arith.constant 0 : index
    %25 = vector.load %arg4[%c1_10, %c0_11] : memref<3x8xf32, #tpu.memory_space<vmem>>, vector<1x8xf32>
    %26 = vector.broadcast %25 : vector<1x8xf32> to vector<8x8xf32>
    %27 = arith.mulf %24, %26 : vector<8x8xf32>
    %28 = vector.extract_strided_slice %2 {offsets = [0, 1], sizes = [8, 1], strides = [1, 1]} : vector<8x3xf32> to vector<8x1xf32>
    %cst_12 = arith.constant 5.000000e-01 : f32
    %29 = vector.broadcast %cst_12 : f32 to vector<8x8xf32>
    %30 = arith.mulf %29, %27 : vector<8x8xf32>
    %31 = arith.mulf %30, %27 : vector<8x8xf32>
    %32 = vector.broadcast %28 : vector<8x1xf32> to vector<8x8xf32>
    %33 = arith.subf %32, %31 : vector<8x8xf32>
    %c1_13 = arith.constant 1 : index
    %c0_14 = arith.constant 0 : index
    %34 = vector.load %arg5[%c1_13, %c0_14] : memref<3x8xf32, #tpu.memory_space<vmem>>, vector<1x8xf32>
    %35 = vector.broadcast %34 : vector<1x8xf32> to vector<8x8xf32>
    %36 = arith.subf %33, %35 : vector<8x8xf32>
    %cst_15 = arith.constant 0.918938517 : f32
    %37 = vector.broadcast %cst_15 : f32 to vector<8x8xf32>
    %38 = arith.subf %36, %37 : vector<8x8xf32>
    %c2 = arith.constant 2 : index
    %c0_16 = arith.constant 0 : index
    %39 = vector.load %arg3[%c2, %c0_16] : memref<3x8xf32, #tpu.memory_space<vmem>>, vector<1x8xf32>
    %40 = vector.broadcast %0 : vector<8x1xf32> to vector<8x8xf32>
    %41 = vector.broadcast %39 : vector<1x8xf32> to vector<8x8xf32>
    %42 = arith.subf %40, %41 : vector<8x8xf32>
    %c2_17 = arith.constant 2 : index
    %c0_18 = arith.constant 0 : index
    %43 = vector.load %arg4[%c2_17, %c0_18] : memref<3x8xf32, #tpu.memory_space<vmem>>, vector<1x8xf32>
    %44 = vector.broadcast %43 : vector<1x8xf32> to vector<8x8xf32>
    %45 = arith.mulf %42, %44 : vector<8x8xf32>
    %46 = vector.extract_strided_slice %2 {offsets = [0, 2], sizes = [8, 1], strides = [1, 1]} : vector<8x3xf32> to vector<8x1xf32>
    %cst_19 = arith.constant 5.000000e-01 : f32
    %47 = vector.broadcast %cst_19 : f32 to vector<8x8xf32>
    %48 = arith.mulf %47, %45 : vector<8x8xf32>
    %49 = arith.mulf %48, %45 : vector<8x8xf32>
    %50 = vector.broadcast %46 : vector<8x1xf32> to vector<8x8xf32>
    %51 = arith.subf %50, %49 : vector<8x8xf32>
    %c2_20 = arith.constant 2 : index
    %c0_21 = arith.constant 0 : index
    %52 = vector.load %arg5[%c2_20, %c0_21] : memref<3x8xf32, #tpu.memory_space<vmem>>, vector<1x8xf32>
    %53 = vector.broadcast %52 : vector<1x8xf32> to vector<8x8xf32>
    %54 = arith.subf %51, %53 : vector<8x8xf32>
    %cst_22 = arith.constant 0.918938517 : f32
    %55 = vector.broadcast %cst_22 : f32 to vector<8x8xf32>
    %56 = arith.subf %54, %55 : vector<8x8xf32>
    %57 = arith.maximumf %20, %38 : vector<8x8xf32>
    %58 = arith.maximumf %57, %56 : vector<8x8xf32>
    %cst_23 = arith.constant 0.000000e+00 : f32
    %59 = vector.broadcast %cst_23 : f32 to vector<8x8xf32>
    %60 = arith.subf %20, %58 : vector<8x8xf32>
    %61 = math.exp %60 : vector<8x8xf32>
    %62 = arith.addf %59, %61 : vector<8x8xf32>
    %63 = arith.subf %38, %58 : vector<8x8xf32>
    %64 = math.exp %63 : vector<8x8xf32>
    %65 = arith.addf %62, %64 : vector<8x8xf32>
    %66 = arith.subf %56, %58 : vector<8x8xf32>
    %67 = math.exp %66 : vector<8x8xf32>
    %68 = arith.addf %65, %67 : vector<8x8xf32>
    %69 = math.log %68 : vector<8x8xf32>
    %70 = arith.addf %58, %69 : vector<8x8xf32>
    %c0_24 = arith.constant 0 : index
    %c0_25 = arith.constant 0 : index
    %71 = vector.load %arg8[%c0_24, %c0_25] : memref<8x8xf32, #tpu.memory_space<vmem>>, vector<8x8xf32>
    tpu.vector_store %arg8[%c0_24, %c0_25], %70 {strides = array<i32>} : memref<8x8xf32, #tpu.memory_space<vmem>>, vector<8x8xf32>,
    %72 = math.exp %70 : vector<8x8xf32>
    %c0_26 = arith.constant 0 : index
    %c0_27 = arith.constant 0 : index
    %73 = vector.load %arg7[%c0_26, %c0_27] : memref<8x8xf32, #tpu.memory_space<vmem>>, vector<8x8xf32>
    tpu.vector_store %arg7[%c0_26, %c0_27], %72 {strides = array<i32>} : memref<8x8xf32, #tpu.memory_space<vmem>>, vector<8x8xf32>,
    %c0_28 = arith.constant 0 : index
    %c0_29 = arith.constant 0 : index
    %74 = vector.load %arg6[%c0_28, %c0_29] : memref<1x8xf32, #tpu.memory_space<vmem>>, vector<1x8xf32>
    %75 = vector.broadcast %74 : vector<1x8xf32> to vector<8x8xf32>
    %76 = vector.broadcast %1 : vector<8x1xf32> to vector<8x8xf32>
    %77 = arith.subf %75, %76 : vector<8x8xf32>
    %78 = arith.mulf %77, %77 : vector<8x8xf32>
    %cst_30 = arith.constant dense<0.000000e+00> : vector<8xf32>
    %79 = vector.multi_reduction <add>, %78, %cst_30 [1] : vector<8x8xf32> to vector<8xf32>
    %80 = vector.shape_cast %79 : vector<8xf32> to vector<8x1xf32>
    %c0_i32 = arith.constant 0 : i32
    %81 = arith.cmpi eq, %arg1, %c0_i32 : i32
    %82 = arith.extui %81 : i1 to i32
    %c0_i32_31 = arith.constant 0 : i32
    %83 = arith.cmpi ne, %82, %c0_i32_31 : i32
    scf.if %83 {
      %cst_38 = arith.constant 0.000000e+00 : f32
      %90 = vector.broadcast %cst_38 : f32 to vector<8x1xf32>
      %c0_39 = arith.constant 0 : index
      %c0_40 = arith.constant 0 : index
      %91 = vector.load %arg9[%c0_39, %c0_40] : memref<8x1xf32, #tpu.memory_space<vmem>>, vector<8x1xf32>
      tpu.vector_store %arg9[%c0_39, %c0_40], %90 {strides = array<i32>} : memref<8x1xf32, #tpu.memory_space<vmem>>, vector<8x1xf32>,
    } else {
    }
    %c0_32 = arith.constant 0 : index
    %c0_33 = arith.constant 0 : index
    %84 = vector.load %arg9[%c0_32, %c0_33] : memref<8x1xf32, #tpu.memory_space<vmem>>, vector<8x1xf32>
    %85 = arith.addf %84, %80 : vector<8x1xf32>
    %c0_34 = arith.constant 0 : index
    %c0_35 = arith.constant 0 : index
    %86 = vector.load %arg9[%c0_34, %c0_35] : memref<8x1xf32, #tpu.memory_space<vmem>>, vector<8x1xf32>
    tpu.vector_store %arg9[%c0_34, %c0_35], %85 {strides = array<i32>} : memref<8x1xf32, #tpu.memory_space<vmem>>, vector<8x1xf32>,
    %c0_i32_36 = arith.constant 0 : i32
    %87 = arith.cmpi eq, %arg1, %c0_i32_36 : i32
    %88 = arith.extui %87 : i1 to i32
    %c0_i32_37 = arith.constant 0 : i32
    %89 = arith.cmpi ne, %88, %c0_i32_37 : i32
    scf.if %89 {
      %c0_38 = arith.constant 0 : index
      %c0_39 = arith.constant 0 : index
      %90 = vector.load %arg9[%c0_38, %c0_39] : memref<8x1xf32, #tpu.memory_space<vmem>>, vector<8x1xf32>
      %cst_40 = arith.constant 1.250000e-01 : f32
      %91 = vector.broadcast %cst_40 : f32 to vector<8x1xf32>
      %92 = arith.mulf %90, %91 : vector<8x1xf32>
      %c0_41 = arith.constant 0 : index
      %c0_42 = arith.constant 0 : index
      %93 = vector.load %arg9[%c0_41, %c0_42] : memref<8x1xf32, #tpu.memory_space<vmem>>, vector<8x1xf32>
      tpu.vector_store %arg9[%c0_41, %c0_42], %92 {strides = array<i32>} : memref<8x1xf32, #tpu.memory_space<vmem>>, vector<8x1xf32>,
    } else {
    }
    return
  }
  func.func @transform_0(%arg0: i32, %arg1: i32) -> (i32, i32) {
    %c0_i32 = arith.constant 0 : i32
    %c0_i32_0 = arith.constant 0 : i32
    return %arg0, %c0_i32 : i32, i32
  }
  func.func @transform_1(%arg0: i32, %arg1: i32) -> (i32, i32) {
    %c0_i32 = arith.constant 0 : i32
    %c0_i32_0 = arith.constant 0 : i32
    return %c0_i32, %arg1 : i32, i32
  }
  func.func @transform_2(%arg0: i32, %arg1: i32) -> (i32, i32) {
    %c0_i32 = arith.constant 0 : i32
    %c0_i32_0 = arith.constant 0 : i32
    return %c0_i32, %arg1 : i32, i32
  }
  func.func @transform_3(%arg0: i32, %arg1: i32) -> (i32, i32) {
    %c0_i32 = arith.constant 0 : i32
    %c0_i32_0 = arith.constant 0 : i32
    return %c0_i32, %arg1 : i32, i32
  }
  func.func @transform_4(%arg0: i32, %arg1: i32) -> (i32, i32) {
    %c0_i32 = arith.constant 0 : i32
    %c0_i32_0 = arith.constant 0 : i32
    return %c0_i32, %arg1 : i32, i32
  }
  func.func @transform_5(%arg0: i32, %arg1: i32) -> (i32, i32) {
    %c0_i32 = arith.constant 0 : i32
    return %arg0, %arg1 : i32, i32
  }
  func.func @transform_6(%arg0: i32, %arg1: i32) -> (i32, i32) {
    %c0_i32 = arith.constant 0 : i32
    return %arg0, %arg1 : i32, i32
  }
  func.func @transform_7(%arg0: i32, %arg1: i32) -> (i32, i32) {
    %c0_i32 = arith.constant 0 : i32
    %c0_i32_0 = arith.constant 0 : i32
    return %arg0, %c0_i32 : i32, i32
  }
}

module attributes {stable_mosaic.version = 11 : i64} {
  func.func @_fused_row_kernel(%arg0: i32, %arg1: memref<8x16xf32, #tpu.memory_space<vmem>>, %arg2: memref<8x1xf32, #tpu.memory_space<vmem>>, %arg3: memref<8x1xf32, #tpu.memory_space<vmem>>, %arg4: memref<8x1xf32, #tpu.memory_space<vmem>>, %arg5: memref<16x50xf32, #tpu.memory_space<vmem>>, %arg6: memref<1x50xf32, #tpu.memory_space<vmem>>, %arg7: memref<50x50xf32, #tpu.memory_space<vmem>>, %arg8: memref<1x50xf32, #tpu.memory_space<vmem>>, %arg9: memref<2x128xf32, #tpu.memory_space<vmem>>, %arg10: memref<1x128xf32, #tpu.memory_space<vmem>>, %arg11: memref<128x128xf32, #tpu.memory_space<vmem>>, %arg12: memref<1x128xf32, #tpu.memory_space<vmem>>, %arg13: memref<128x128xf32, #tpu.memory_space<vmem>>, %arg14: memref<1x128xf32, #tpu.memory_space<vmem>>, %arg15: memref<128x1xf32, #tpu.memory_space<vmem>>, %arg16: memref<1x1xf32, #tpu.memory_space<vmem>>, %arg17: memref<128x1xf32, #tpu.memory_space<vmem>>, %arg18: memref<1x1xf32, #tpu.memory_space<vmem>>, %arg19: memref<50x3xf32, #tpu.memory_space<vmem>>, %arg20: memref<3x50xf32, #tpu.memory_space<vmem>>, %arg21: memref<3x1xf32, #tpu.memory_space<vmem>>, %arg22: memref<3x50xf32, #tpu.memory_space<vmem>>, %arg23: memref<3x1xf32, #tpu.memory_space<vmem>>, %arg24: memref<5x50x50xf32, #tpu.memory_space<vmem>>, %arg25: memref<5x50xf32, #tpu.memory_space<vmem>>, %arg26: memref<5x50x1xf32, #tpu.memory_space<vmem>>, %arg27: memref<5x1xf32, #tpu.memory_space<vmem>>, %arg28: memref<8x16xf32, #tpu.memory_space<vmem>>, %arg29: memref<3x8xf32, #tpu.memory_space<vmem>>, %arg30: memref<3x8xf32, #tpu.memory_space<vmem>>, %arg31: memref<3x8xf32, #tpu.memory_space<vmem>>) attributes {dimension_semantics = [#tpu.dimension_semantics<parallel>], iteration_bounds = array<i64: 1>, scalar_prefetch = 0 : i64, scratch_operands = 0 : i64, tpu.core_type = #tpu.core_type<tc>, window_params = [{transform_indices = @transform_0, window_bounds = array<i64: 8, 16>}, {transform_indices = @transform_1, window_bounds = array<i64: 8, 1>}, {transform_indices = @transform_2, window_bounds = array<i64: 8, 1>}, {transform_indices = @transform_3, window_bounds = array<i64: 8, 1>}, {pipeline_mode = #tpu.pipeline_mode<synchronous>, transform_indices = @transform_4, window_bounds = array<i64: 16, 50>}, {pipeline_mode = #tpu.pipeline_mode<synchronous>, transform_indices = @transform_5, window_bounds = array<i64: 1, 50>}, {pipeline_mode = #tpu.pipeline_mode<synchronous>, transform_indices = @transform_6, window_bounds = array<i64: 50, 50>}, {pipeline_mode = #tpu.pipeline_mode<synchronous>, transform_indices = @transform_7, window_bounds = array<i64: 1, 50>}, {pipeline_mode = #tpu.pipeline_mode<synchronous>, transform_indices = @transform_8, window_bounds = array<i64: 2, 128>}, {pipeline_mode = #tpu.pipeline_mode<synchronous>, transform_indices = @transform_9, window_bounds = array<i64: 1, 128>}, {pipeline_mode = #tpu.pipeline_mode<synchronous>, transform_indices = @transform_10, window_bounds = array<i64: 128, 128>}, {pipeline_mode = #tpu.pipeline_mode<synchronous>, transform_indices = @transform_11, window_bounds = array<i64: 1, 128>}, {pipeline_mode = #tpu.pipeline_mode<synchronous>, transform_indices = @transform_12, window_bounds = array<i64: 128, 128>}, {pipeline_mode = #tpu.pipeline_mode<synchronous>, transform_indices = @transform_13, window_bounds = array<i64: 1, 128>}, {pipeline_mode = #tpu.pipeline_mode<synchronous>, transform_indices = @transform_14, window_bounds = array<i64: 128, 1>}, {pipeline_mode = #tpu.pipeline_mode<synchronous>, transform_indices = @transform_15, window_bounds = array<i64: 1, 1>}, {pipeline_mode = #tpu.pipeline_mode<synchronous>, transform_indices = @transform_16, window_bounds = array<i64: 128, 1>}, {pipeline_mode = #tpu.pipeline_mode<synchronous>, transform_indices = @transform_17, window_bounds = array<i64: 1, 1>}, {pipeline_mode = #tpu.pipeline_mode<synchronous>, transform_indices = @transform_18, window_bounds = array<i64: 50, 3>}, {pipeline_mode = #tpu.pipeline_mode<synchronous>, transform_indices = @transform_19, window_bounds = array<i64: 3, 50>}, {pipeline_mode = #tpu.pipeline_mode<synchronous>, transform_indices = @transform_20, window_bounds = array<i64: 3, 1>}, {pipeline_mode = #tpu.pipeline_mode<synchronous>, transform_indices = @transform_21, window_bounds = array<i64: 3, 50>}, {pipeline_mode = #tpu.pipeline_mode<synchronous>, transform_indices = @transform_22, window_bounds = array<i64: 3, 1>}, {pipeline_mode = #tpu.pipeline_mode<synchronous>, transform_indices = @transform_23, window_bounds = array<i64: 5, 50, 50>}, {pipeline_mode = #tpu.pipeline_mode<synchronous>, transform_indices = @transform_24, window_bounds = array<i64: 5, 50>}, {pipeline_mode = #tpu.pipeline_mode<synchronous>, transform_indices = @transform_25, window_bounds = array<i64: 5, 50, 1>}, {pipeline_mode = #tpu.pipeline_mode<synchronous>, transform_indices = @transform_26, window_bounds = array<i64: 5, 1>}, {transform_indices = @transform_27, window_bounds = array<i64: 8, 16>}, {transform_indices = @transform_28, window_bounds = array<i64: 3, 8>}, {transform_indices = @transform_29, window_bounds = array<i64: 3, 8>}, {transform_indices = @transform_30, window_bounds = array<i64: 3, 8>}]} {
    %c0 = arith.constant 0 : index
    %c0_0 = arith.constant 0 : index
    %0 = vector.load %arg1[%c0, %c0_0] : memref<8x16xf32, #tpu.memory_space<vmem>>, vector<8x16xf32>
    %c0_1 = arith.constant 0 : index
    %c0_2 = arith.constant 0 : index
    %1 = vector.load %arg5[%c0_1, %c0_2] : memref<16x50xf32, #tpu.memory_space<vmem>>, vector<16x50xf32>
    %cst = arith.constant dense<0.000000e+00> : vector<8x50xf32>
    %2 = tpu.matmul %0, %1, %cst {dimension_numbers = #tpu.dot_dimension_numbers<[1], [0], [0], [1], [0, 0, 1, 1], [], []>} : vector<8x16xf32>, vector<16x50xf32>, vector<8x50xf32> -> vector<8x50xf32>
    %c0_3 = arith.constant 0 : index
    %c0_4 = arith.constant 0 : index
    %3 = vector.load %arg6[%c0_3, %c0_4] : memref<1x50xf32, #tpu.memory_space<vmem>>, vector<1x50xf32>
    %4 = vector.broadcast %3 : vector<1x50xf32> to vector<8x50xf32>
    %5 = arith.addf %2, %4 : vector<8x50xf32>
    %cst_5 = arith.constant 0.000000e+00 : f32
    %6 = vector.broadcast %cst_5 : f32 to vector<8x50xf32>
    %7 = arith.maximumf %5, %6 : vector<8x50xf32>
    %c0_6 = arith.constant 0 : index
    %c0_7 = arith.constant 0 : index
    %8 = vector.load %arg7[%c0_6, %c0_7] : memref<50x50xf32, #tpu.memory_space<vmem>>, vector<50x50xf32>
    %cst_8 = arith.constant dense<0.000000e+00> : vector<8x50xf32>
    %9 = tpu.matmul %7, %8, %cst_8 {dimension_numbers = #tpu.dot_dimension_numbers<[1], [0], [0], [1], [0, 0, 1, 1], [], []>} : vector<8x50xf32>, vector<50x50xf32>, vector<8x50xf32> -> vector<8x50xf32>
    %c0_9 = arith.constant 0 : index
    %c0_10 = arith.constant 0 : index
    %10 = vector.load %arg8[%c0_9, %c0_10] : memref<1x50xf32, #tpu.memory_space<vmem>>, vector<1x50xf32>
    %11 = vector.broadcast %10 : vector<1x50xf32> to vector<8x50xf32>
    %12 = arith.addf %9, %11 : vector<8x50xf32>
    %cst_11 = arith.constant 0.000000e+00 : f32
    %13 = vector.broadcast %cst_11 : f32 to vector<8x50xf32>
    %14 = arith.maximumf %12, %13 : vector<8x50xf32>
    %c0_12 = arith.constant 0 : index
    %c0_13 = arith.constant 0 : index
    %15 = vector.load %arg2[%c0_12, %c0_13] : memref<8x1xf32, #tpu.memory_space<vmem>>, vector<8x1xf32>
    %c0_14 = arith.constant 0 : index
    %c0_15 = arith.constant 0 : index
    %16 = vector.load %arg3[%c0_14, %c0_15] : memref<8x1xf32, #tpu.memory_space<vmem>>, vector<8x1xf32>
    %c0_16 = arith.constant 0 : index
    %c0_17 = arith.constant 0 : index
    %17 = vector.load %arg9[%c0_16, %c0_17] : memref<2x128xf32, #tpu.memory_space<vmem>>, vector<2x128xf32>
    %18 = vector.extract_strided_slice %17 {offsets = [0, 0], sizes = [1, 128], strides = [1, 1]} : vector<2x128xf32> to vector<1x128xf32>
    %19 = vector.broadcast %15 : vector<8x1xf32> to vector<8x128xf32>
    %20 = vector.broadcast %18 : vector<1x128xf32> to vector<8x128xf32>
    %21 = arith.mulf %19, %20 : vector<8x128xf32>
    %22 = vector.extract_strided_slice %17 {offsets = [1, 0], sizes = [1, 128], strides = [1, 1]} : vector<2x128xf32> to vector<1x128xf32>
    %23 = vector.broadcast %16 : vector<8x1xf32> to vector<8x128xf32>
    %24 = vector.broadcast %22 : vector<1x128xf32> to vector<8x128xf32>
    %25 = arith.mulf %23, %24 : vector<8x128xf32>
    %26 = arith.addf %21, %25 : vector<8x128xf32>
    %c0_18 = arith.constant 0 : index
    %c0_19 = arith.constant 0 : index
    %27 = vector.load %arg10[%c0_18, %c0_19] : memref<1x128xf32, #tpu.memory_space<vmem>>, vector<1x128xf32>
    %28 = vector.broadcast %27 : vector<1x128xf32> to vector<8x128xf32>
    %29 = arith.addf %26, %28 : vector<8x128xf32>
    %cst_20 = arith.constant 0.000000e+00 : f32
    %30 = vector.broadcast %cst_20 : f32 to vector<8x128xf32>
    %31 = arith.maximumf %29, %30 : vector<8x128xf32>
    %c0_21 = arith.constant 0 : index
    %c0_22 = arith.constant 0 : index
    %32 = vector.load %arg11[%c0_21, %c0_22] : memref<128x128xf32, #tpu.memory_space<vmem>>, vector<128x128xf32>
    %cst_23 = arith.constant dense<0.000000e+00> : vector<8x128xf32>
    %33 = tpu.matmul %31, %32, %cst_23 {dimension_numbers = #tpu.dot_dimension_numbers<[1], [0], [0], [1], [0, 0, 1, 1], [], []>} : vector<8x128xf32>, vector<128x128xf32>, vector<8x128xf32> -> vector<8x128xf32>
    %c0_24 = arith.constant 0 : index
    %c0_25 = arith.constant 0 : index
    %34 = vector.load %arg12[%c0_24, %c0_25] : memref<1x128xf32, #tpu.memory_space<vmem>>, vector<1x128xf32>
    %35 = vector.broadcast %34 : vector<1x128xf32> to vector<8x128xf32>
    %36 = arith.addf %33, %35 : vector<8x128xf32>
    %cst_26 = arith.constant 0.000000e+00 : f32
    %37 = vector.broadcast %cst_26 : f32 to vector<8x128xf32>
    %38 = arith.maximumf %36, %37 : vector<8x128xf32>
    %c0_27 = arith.constant 0 : index
    %c0_28 = arith.constant 0 : index
    %39 = vector.load %arg13[%c0_27, %c0_28] : memref<128x128xf32, #tpu.memory_space<vmem>>, vector<128x128xf32>
    %cst_29 = arith.constant dense<0.000000e+00> : vector<8x128xf32>
    %40 = tpu.matmul %38, %39, %cst_29 {dimension_numbers = #tpu.dot_dimension_numbers<[1], [0], [0], [1], [0, 0, 1, 1], [], []>} : vector<8x128xf32>, vector<128x128xf32>, vector<8x128xf32> -> vector<8x128xf32>
    %c0_30 = arith.constant 0 : index
    %c0_31 = arith.constant 0 : index
    %41 = vector.load %arg14[%c0_30, %c0_31] : memref<1x128xf32, #tpu.memory_space<vmem>>, vector<1x128xf32>
    %42 = vector.broadcast %41 : vector<1x128xf32> to vector<8x128xf32>
    %43 = arith.addf %40, %42 : vector<8x128xf32>
    %cst_32 = arith.constant 0.000000e+00 : f32
    %44 = vector.broadcast %cst_32 : f32 to vector<8x128xf32>
    %45 = arith.maximumf %43, %44 : vector<8x128xf32>
    %c0_33 = arith.constant 0 : index
    %c0_34 = arith.constant 0 : index
    %46 = vector.load %arg15[%c0_33, %c0_34] : memref<128x1xf32, #tpu.memory_space<vmem>>, vector<128x1xf32>
    %cst_35 = arith.constant dense<0.000000e+00> : vector<8x1xf32>
    %47 = tpu.matmul %45, %46, %cst_35 {dimension_numbers = #tpu.dot_dimension_numbers<[1], [0], [0], [1], [0, 0, 1, 1], [], []>} : vector<8x128xf32>, vector<128x1xf32>, vector<8x1xf32> -> vector<8x1xf32>
    %c0_36 = arith.constant 0 : index
    %c0_37 = arith.constant 0 : index
    %48 = vector.load %arg16[%c0_36, %c0_37] : memref<1x1xf32, #tpu.memory_space<vmem>>, vector<1x1xf32>
    %49 = vector.broadcast %48 : vector<1x1xf32> to vector<8x1xf32>
    %50 = arith.addf %47, %49 : vector<8x1xf32>
    %c0_38 = arith.constant 0 : index
    %c0_39 = arith.constant 0 : index
    %51 = vector.load %arg17[%c0_38, %c0_39] : memref<128x1xf32, #tpu.memory_space<vmem>>, vector<128x1xf32>
    %cst_40 = arith.constant dense<0.000000e+00> : vector<8x1xf32>
    %52 = tpu.matmul %45, %51, %cst_40 {dimension_numbers = #tpu.dot_dimension_numbers<[1], [0], [0], [1], [0, 0, 1, 1], [], []>} : vector<8x128xf32>, vector<128x1xf32>, vector<8x1xf32> -> vector<8x1xf32>
    %c0_41 = arith.constant 0 : index
    %c0_42 = arith.constant 0 : index
    %53 = vector.load %arg18[%c0_41, %c0_42] : memref<1x1xf32, #tpu.memory_space<vmem>>, vector<1x1xf32>
    %54 = vector.broadcast %53 : vector<1x1xf32> to vector<8x1xf32>
    %55 = arith.addf %52, %54 : vector<8x1xf32>
    %56 = math.exp %55 : vector<8x1xf32>
    %c0_43 = arith.constant 0 : index
    %c0_44 = arith.constant 0 : index
    %57 = vector.load %arg4[%c0_43, %c0_44] : memref<8x1xf32, #tpu.memory_space<vmem>>, vector<8x1xf32>
    %58 = arith.mulf %57, %56 : vector<8x1xf32>
    %59 = arith.addf %50, %58 : vector<8x1xf32>
    %cst_45 = arith.constant -5.000000e-01 : f32
    %60 = vector.broadcast %cst_45 : f32 to vector<8x1xf32>
    %61 = arith.mulf %60, %57 : vector<8x1xf32>
    %62 = arith.mulf %61, %57 : vector<8x1xf32>
    %63 = arith.subf %62, %55 : vector<8x1xf32>
    %cst_46 = arith.constant 0.918938517 : f32
    %64 = vector.broadcast %cst_46 : f32 to vector<8x1xf32>
    %65 = arith.subf %63, %64 : vector<8x1xf32>
    %c0_47 = arith.constant 0 : index
    %c0_48 = arith.constant 0 : index
    %66 = vector.load %arg19[%c0_47, %c0_48] : memref<50x3xf32, #tpu.memory_space<vmem>>, vector<50x3xf32>
    %cst_49 = arith.constant dense<0.000000e+00> : vector<8x3xf32>
    %67 = tpu.matmul %14, %66, %cst_49 {dimension_numbers = #tpu.dot_dimension_numbers<[1], [0], [0], [1], [0, 0, 1, 1], [], []>} : vector<8x50xf32>, vector<50x3xf32>, vector<8x3xf32> -> vector<8x3xf32>
    %cst_50 = arith.constant dense<0xFF800000> : vector<8xf32>
    %68 = vector.multi_reduction <maximumf>, %67, %cst_50 [1] : vector<8x3xf32> to vector<8xf32>
    %69 = vector.shape_cast %68 : vector<8xf32> to vector<8x1xf32>
    %70 = vector.broadcast %69 : vector<8x1xf32> to vector<8x3xf32>
    %71 = arith.subf %67, %70 : vector<8x3xf32>
    %72 = math.exp %71 : vector<8x3xf32>
    %cst_51 = arith.constant dense<0.000000e+00> : vector<8xf32>
    %73 = vector.multi_reduction <add>, %72, %cst_51 [1] : vector<8x3xf32> to vector<8xf32>
    %74 = vector.shape_cast %73 : vector<8xf32> to vector<8x1xf32>
    %75 = math.log %74 : vector<8x1xf32>
    %76 = vector.broadcast %75 : vector<8x1xf32> to vector<8x3xf32>
    %77 = arith.subf %71, %76 : vector<8x3xf32>
    %c0_52 = arith.constant 0 : index
    %c0_53 = arith.constant 0 : index
    %78 = vector.load %arg20[%c0_52, %c0_53] : memref<3x50xf32, #tpu.memory_space<vmem>>, vector<3x50xf32>
    %cst_54 = arith.constant dense<0.000000e+00> : vector<3x8xf32>
    %79 = tpu.matmul %78, %14, %cst_54 {dimension_numbers = #tpu.dot_dimension_numbers<[1], [1], [0], [0], [0, 0, 1, 0], [], []>} : vector<3x50xf32>, vector<8x50xf32>, vector<3x8xf32> -> vector<3x8xf32>
    %c0_55 = arith.constant 0 : index
    %c0_56 = arith.constant 0 : index
    %80 = vector.load %arg21[%c0_55, %c0_56] : memref<3x1xf32, #tpu.memory_space<vmem>>, vector<3x1xf32>
    %81 = vector.broadcast %80 : vector<3x1xf32> to vector<3x8xf32>
    %82 = arith.addf %79, %81 : vector<3x8xf32>
    %c0_57 = arith.constant 0 : index
    %c0_58 = arith.constant 0 : index
    %83 = vector.load %arg22[%c0_57, %c0_58] : memref<3x50xf32, #tpu.memory_space<vmem>>, vector<3x50xf32>
    %cst_59 = arith.constant dense<0.000000e+00> : vector<3x8xf32>
    %84 = tpu.matmul %83, %14, %cst_59 {dimension_numbers = #tpu.dot_dimension_numbers<[1], [1], [0], [0], [0, 0, 1, 0], [], []>} : vector<3x50xf32>, vector<8x50xf32>, vector<3x8xf32> -> vector<3x8xf32>
    %c0_60 = arith.constant 0 : index
    %c0_61 = arith.constant 0 : index
    %85 = vector.load %arg23[%c0_60, %c0_61] : memref<3x1xf32, #tpu.memory_space<vmem>>, vector<3x1xf32>
    %86 = vector.broadcast %85 : vector<3x1xf32> to vector<3x8xf32>
    %87 = arith.addf %84, %86 : vector<3x8xf32>
    %c0_62 = arith.constant 0 : index
    %c0_63 = arith.constant 0 : index
    %88 = vector.load %arg29[%c0_62, %c0_63] : memref<3x8xf32, #tpu.memory_space<vmem>>, vector<3x8xf32>
    tpu.vector_store %arg29[%c0_62, %c0_63], %82 {strides = array<i32>} : memref<3x8xf32, #tpu.memory_space<vmem>>, vector<3x8xf32>,
    %c0_64 = arith.constant 0 : index
    %c0_65 = arith.constant 0 : index
    %89 = vector.load %arg31[%c0_64, %c0_65] : memref<3x8xf32, #tpu.memory_space<vmem>>, vector<3x8xf32>
    tpu.vector_store %arg31[%c0_64, %c0_65], %87 {strides = array<i32>} : memref<3x8xf32, #tpu.memory_space<vmem>>, vector<3x8xf32>,
    %cst_66 = arith.constant 0.000000e+00 : f32
    %90 = vector.broadcast %cst_66 : f32 to vector<3x8xf32>
    %91 = arith.subf %90, %87 : vector<3x8xf32>
    %92 = math.exp %91 : vector<3x8xf32>
    %c0_67 = arith.constant 0 : index
    %c0_68 = arith.constant 0 : index
    %93 = vector.load %arg30[%c0_67, %c0_68] : memref<3x8xf32, #tpu.memory_space<vmem>>, vector<3x8xf32>
    tpu.vector_store %arg30[%c0_67, %c0_68], %92 {strides = array<i32>} : memref<3x8xf32, #tpu.memory_space<vmem>>, vector<3x8xf32>,
    %cst_69 = arith.constant 1.000000e+00 : f32
    %94 = vector.broadcast %cst_69 : f32 to vector<8x1xf32>
    %95 = arith.mulf %59, %59 : vector<8x1xf32>
    %cst_70 = arith.constant 3.300000e-01 : f32
    %96 = vector.broadcast %cst_70 : f32 to vector<8x1xf32>
    %97 = arith.subf %59, %96 : vector<8x1xf32>
    %cst_71 = arith.constant 0.000000e+00 : f32
    %98 = vector.broadcast %cst_71 : f32 to vector<8x1xf32>
    %99 = arith.maximumf %97, %98 : vector<8x1xf32>
    %100 = arith.mulf %99, %99 : vector<8x1xf32>
    %cst_72 = arith.constant 6.600000e-01 : f32
    %101 = vector.broadcast %cst_72 : f32 to vector<8x1xf32>
    %102 = arith.subf %59, %101 : vector<8x1xf32>
    %cst_73 = arith.constant 0.000000e+00 : f32
    %103 = vector.broadcast %cst_73 : f32 to vector<8x1xf32>
    %104 = arith.maximumf %102, %103 : vector<8x1xf32>
    %105 = arith.mulf %104, %104 : vector<8x1xf32>
    %c0_74 = arith.constant 0 : index
    %c0_75 = arith.constant 0 : index
    %106 = vector.load %arg25[%c0_74, %c0_75] : memref<5x50xf32, #tpu.memory_space<vmem>>, vector<1x50xf32>
    %107 = vector.broadcast %94 : vector<8x1xf32> to vector<8x50xf32>
    %108 = vector.broadcast %106 : vector<1x50xf32> to vector<8x50xf32>
    %109 = arith.mulf %107, %108 : vector<8x50xf32>
    %c1 = arith.constant 1 : index
    %c0_76 = arith.constant 0 : index
    %110 = vector.load %arg25[%c1, %c0_76] : memref<5x50xf32, #tpu.memory_space<vmem>>, vector<1x50xf32>
    %111 = vector.broadcast %59 : vector<8x1xf32> to vector<8x50xf32>
    %112 = vector.broadcast %110 : vector<1x50xf32> to vector<8x50xf32>
    %113 = arith.mulf %111, %112 : vector<8x50xf32>
    %114 = arith.addf %109, %113 : vector<8x50xf32>
    %c2 = arith.constant 2 : index
    %c0_77 = arith.constant 0 : index
    %115 = vector.load %arg25[%c2, %c0_77] : memref<5x50xf32, #tpu.memory_space<vmem>>, vector<1x50xf32>
    %116 = vector.broadcast %95 : vector<8x1xf32> to vector<8x50xf32>
    %117 = vector.broadcast %115 : vector<1x50xf32> to vector<8x50xf32>
    %118 = arith.mulf %116, %117 : vector<8x50xf32>
    %119 = arith.addf %114, %118 : vector<8x50xf32>
    %c3 = arith.constant 3 : index
    %c0_78 = arith.constant 0 : index
    %120 = vector.load %arg25[%c3, %c0_78] : memref<5x50xf32, #tpu.memory_space<vmem>>, vector<1x50xf32>
    %121 = vector.broadcast %100 : vector<8x1xf32> to vector<8x50xf32>
    %122 = vector.broadcast %120 : vector<1x50xf32> to vector<8x50xf32>
    %123 = arith.mulf %121, %122 : vector<8x50xf32>
    %124 = arith.addf %119, %123 : vector<8x50xf32>
    %c4 = arith.constant 4 : index
    %c0_79 = arith.constant 0 : index
    %125 = vector.load %arg25[%c4, %c0_79] : memref<5x50xf32, #tpu.memory_space<vmem>>, vector<1x50xf32>
    %126 = vector.broadcast %105 : vector<8x1xf32> to vector<8x50xf32>
    %127 = vector.broadcast %125 : vector<1x50xf32> to vector<8x50xf32>
    %128 = arith.mulf %126, %127 : vector<8x50xf32>
    %129 = arith.addf %124, %128 : vector<8x50xf32>
    %130 = vector.broadcast %94 : vector<8x1xf32> to vector<8x50xf32>
    %131 = arith.mulf %130, %14 : vector<8x50xf32>
    %c0_80 = arith.constant 0 : index
    %c0_81 = arith.constant 0 : index
    %c0_82 = arith.constant 0 : index
    %132 = vector.load %arg24[%c0_80, %c0_81, %c0_82] : memref<5x50x50xf32, #tpu.memory_space<vmem>>, vector<1x50x50xf32>
    %133 = vector.shape_cast %132 : vector<1x50x50xf32> to vector<50x50xf32>
    %cst_83 = arith.constant dense<0.000000e+00> : vector<8x50xf32>
    %134 = tpu.matmul %131, %133, %cst_83 {dimension_numbers = #tpu.dot_dimension_numbers<[1], [0], [0], [1], [0, 0, 1, 1], [], []>} : vector<8x50xf32>, vector<50x50xf32>, vector<8x50xf32> -> vector<8x50xf32>
    %135 = arith.addf %129, %134 : vector<8x50xf32>
    %136 = vector.broadcast %59 : vector<8x1xf32> to vector<8x50xf32>
    %137 = arith.mulf %136, %14 : vector<8x50xf32>
    %c1_84 = arith.constant 1 : index
    %c0_85 = arith.constant 0 : index
    %c0_86 = arith.constant 0 : index
    %138 = vector.load %arg24[%c1_84, %c0_85, %c0_86] : memref<5x50x50xf32, #tpu.memory_space<vmem>>, vector<1x50x50xf32>
    %139 = vector.shape_cast %138 : vector<1x50x50xf32> to vector<50x50xf32>
    %cst_87 = arith.constant dense<0.000000e+00> : vector<8x50xf32>
    %140 = tpu.matmul %137, %139, %cst_87 {dimension_numbers = #tpu.dot_dimension_numbers<[1], [0], [0], [1], [0, 0, 1, 1], [], []>} : vector<8x50xf32>, vector<50x50xf32>, vector<8x50xf32> -> vector<8x50xf32>
    %141 = arith.addf %135, %140 : vector<8x50xf32>
    %142 = vector.broadcast %95 : vector<8x1xf32> to vector<8x50xf32>
    %143 = arith.mulf %142, %14 : vector<8x50xf32>
    %c2_88 = arith.constant 2 : index
    %c0_89 = arith.constant 0 : index
    %c0_90 = arith.constant 0 : index
    %144 = vector.load %arg24[%c2_88, %c0_89, %c0_90] : memref<5x50x50xf32, #tpu.memory_space<vmem>>, vector<1x50x50xf32>
    %145 = vector.shape_cast %144 : vector<1x50x50xf32> to vector<50x50xf32>
    %cst_91 = arith.constant dense<0.000000e+00> : vector<8x50xf32>
    %146 = tpu.matmul %143, %145, %cst_91 {dimension_numbers = #tpu.dot_dimension_numbers<[1], [0], [0], [1], [0, 0, 1, 1], [], []>} : vector<8x50xf32>, vector<50x50xf32>, vector<8x50xf32> -> vector<8x50xf32>
    %147 = arith.addf %141, %146 : vector<8x50xf32>
    %148 = vector.broadcast %100 : vector<8x1xf32> to vector<8x50xf32>
    %149 = arith.mulf %148, %14 : vector<8x50xf32>
    %c3_92 = arith.constant 3 : index
    %c0_93 = arith.constant 0 : index
    %c0_94 = arith.constant 0 : index
    %150 = vector.load %arg24[%c3_92, %c0_93, %c0_94] : memref<5x50x50xf32, #tpu.memory_space<vmem>>, vector<1x50x50xf32>
    %151 = vector.shape_cast %150 : vector<1x50x50xf32> to vector<50x50xf32>
    %cst_95 = arith.constant dense<0.000000e+00> : vector<8x50xf32>
    %152 = tpu.matmul %149, %151, %cst_95 {dimension_numbers = #tpu.dot_dimension_numbers<[1], [0], [0], [1], [0, 0, 1, 1], [], []>} : vector<8x50xf32>, vector<50x50xf32>, vector<8x50xf32> -> vector<8x50xf32>
    %153 = arith.addf %147, %152 : vector<8x50xf32>
    %154 = vector.broadcast %105 : vector<8x1xf32> to vector<8x50xf32>
    %155 = arith.mulf %154, %14 : vector<8x50xf32>
    %c4_96 = arith.constant 4 : index
    %c0_97 = arith.constant 0 : index
    %c0_98 = arith.constant 0 : index
    %156 = vector.load %arg24[%c4_96, %c0_97, %c0_98] : memref<5x50x50xf32, #tpu.memory_space<vmem>>, vector<1x50x50xf32>
    %157 = vector.shape_cast %156 : vector<1x50x50xf32> to vector<50x50xf32>
    %cst_99 = arith.constant dense<0.000000e+00> : vector<8x50xf32>
    %158 = tpu.matmul %155, %157, %cst_99 {dimension_numbers = #tpu.dot_dimension_numbers<[1], [0], [0], [1], [0, 0, 1, 1], [], []>} : vector<8x50xf32>, vector<50x50xf32>, vector<8x50xf32> -> vector<8x50xf32>
    %159 = arith.addf %153, %158 : vector<8x50xf32>
    %cst_100 = arith.constant 0.000000e+00 : f32
    %160 = vector.broadcast %cst_100 : f32 to vector<8x50xf32>
    %161 = arith.maximumf %159, %160 : vector<8x50xf32>
    %c0_101 = arith.constant 0 : index
    %c0_102 = arith.constant 0 : index
    %162 = vector.load %arg27[%c0_101, %c0_102] : memref<5x1xf32, #tpu.memory_space<vmem>>, vector<1x1xf32>
    %163 = vector.broadcast %162 : vector<1x1xf32> to vector<8x1xf32>
    %164 = arith.mulf %94, %163 : vector<8x1xf32>
    %c1_103 = arith.constant 1 : index
    %c0_104 = arith.constant 0 : index
    %165 = vector.load %arg27[%c1_103, %c0_104] : memref<5x1xf32, #tpu.memory_space<vmem>>, vector<1x1xf32>
    %166 = vector.broadcast %165 : vector<1x1xf32> to vector<8x1xf32>
    %167 = arith.mulf %59, %166 : vector<8x1xf32>
    %168 = arith.addf %164, %167 : vector<8x1xf32>
    %c2_105 = arith.constant 2 : index
    %c0_106 = arith.constant 0 : index
    %169 = vector.load %arg27[%c2_105, %c0_106] : memref<5x1xf32, #tpu.memory_space<vmem>>, vector<1x1xf32>
    %170 = vector.broadcast %169 : vector<1x1xf32> to vector<8x1xf32>
    %171 = arith.mulf %95, %170 : vector<8x1xf32>
    %172 = arith.addf %168, %171 : vector<8x1xf32>
    %c3_107 = arith.constant 3 : index
    %c0_108 = arith.constant 0 : index
    %173 = vector.load %arg27[%c3_107, %c0_108] : memref<5x1xf32, #tpu.memory_space<vmem>>, vector<1x1xf32>
    %174 = vector.broadcast %173 : vector<1x1xf32> to vector<8x1xf32>
    %175 = arith.mulf %100, %174 : vector<8x1xf32>
    %176 = arith.addf %172, %175 : vector<8x1xf32>
    %c4_109 = arith.constant 4 : index
    %c0_110 = arith.constant 0 : index
    %177 = vector.load %arg27[%c4_109, %c0_110] : memref<5x1xf32, #tpu.memory_space<vmem>>, vector<1x1xf32>
    %178 = vector.broadcast %177 : vector<1x1xf32> to vector<8x1xf32>
    %179 = arith.mulf %105, %178 : vector<8x1xf32>
    %180 = arith.addf %176, %179 : vector<8x1xf32>
    %181 = vector.broadcast %94 : vector<8x1xf32> to vector<8x50xf32>
    %182 = arith.mulf %181, %161 : vector<8x50xf32>
    %c0_111 = arith.constant 0 : index
    %c0_112 = arith.constant 0 : index
    %c0_113 = arith.constant 0 : index
    %183 = vector.load %arg26[%c0_111, %c0_112, %c0_113] : memref<5x50x1xf32, #tpu.memory_space<vmem>>, vector<1x50x1xf32>
    %184 = vector.shape_cast %183 : vector<1x50x1xf32> to vector<50x1xf32>
    %cst_114 = arith.constant dense<0.000000e+00> : vector<8x1xf32>
    %185 = tpu.matmul %182, %184, %cst_114 {dimension_numbers = #tpu.dot_dimension_numbers<[1], [0], [0], [1], [0, 0, 1, 1], [], []>} : vector<8x50xf32>, vector<50x1xf32>, vector<8x1xf32> -> vector<8x1xf32>
    %186 = arith.addf %180, %185 : vector<8x1xf32>
    %187 = vector.broadcast %59 : vector<8x1xf32> to vector<8x50xf32>
    %188 = arith.mulf %187, %161 : vector<8x50xf32>
    %c1_115 = arith.constant 1 : index
    %c0_116 = arith.constant 0 : index
    %c0_117 = arith.constant 0 : index
    %189 = vector.load %arg26[%c1_115, %c0_116, %c0_117] : memref<5x50x1xf32, #tpu.memory_space<vmem>>, vector<1x50x1xf32>
    %190 = vector.shape_cast %189 : vector<1x50x1xf32> to vector<50x1xf32>
    %cst_118 = arith.constant dense<0.000000e+00> : vector<8x1xf32>
    %191 = tpu.matmul %188, %190, %cst_118 {dimension_numbers = #tpu.dot_dimension_numbers<[1], [0], [0], [1], [0, 0, 1, 1], [], []>} : vector<8x50xf32>, vector<50x1xf32>, vector<8x1xf32> -> vector<8x1xf32>
    %192 = arith.addf %186, %191 : vector<8x1xf32>
    %193 = vector.broadcast %95 : vector<8x1xf32> to vector<8x50xf32>
    %194 = arith.mulf %193, %161 : vector<8x50xf32>
    %c2_119 = arith.constant 2 : index
    %c0_120 = arith.constant 0 : index
    %c0_121 = arith.constant 0 : index
    %195 = vector.load %arg26[%c2_119, %c0_120, %c0_121] : memref<5x50x1xf32, #tpu.memory_space<vmem>>, vector<1x50x1xf32>
    %196 = vector.shape_cast %195 : vector<1x50x1xf32> to vector<50x1xf32>
    %cst_122 = arith.constant dense<0.000000e+00> : vector<8x1xf32>
    %197 = tpu.matmul %194, %196, %cst_122 {dimension_numbers = #tpu.dot_dimension_numbers<[1], [0], [0], [1], [0, 0, 1, 1], [], []>} : vector<8x50xf32>, vector<50x1xf32>, vector<8x1xf32> -> vector<8x1xf32>
    %198 = arith.addf %192, %197 : vector<8x1xf32>
    %199 = vector.broadcast %100 : vector<8x1xf32> to vector<8x50xf32>
    %200 = arith.mulf %199, %161 : vector<8x50xf32>
    %c3_123 = arith.constant 3 : index
    %c0_124 = arith.constant 0 : index
    %c0_125 = arith.constant 0 : index
    %201 = vector.load %arg26[%c3_123, %c0_124, %c0_125] : memref<5x50x1xf32, #tpu.memory_space<vmem>>, vector<1x50x1xf32>
    %202 = vector.shape_cast %201 : vector<1x50x1xf32> to vector<50x1xf32>
    %cst_126 = arith.constant dense<0.000000e+00> : vector<8x1xf32>
    %203 = tpu.matmul %200, %202, %cst_126 {dimension_numbers = #tpu.dot_dimension_numbers<[1], [0], [0], [1], [0, 0, 1, 1], [], []>} : vector<8x50xf32>, vector<50x1xf32>, vector<8x1xf32> -> vector<8x1xf32>
    %204 = arith.addf %198, %203 : vector<8x1xf32>
    %205 = vector.broadcast %105 : vector<8x1xf32> to vector<8x50xf32>
    %206 = arith.mulf %205, %161 : vector<8x50xf32>
    %c4_127 = arith.constant 4 : index
    %c0_128 = arith.constant 0 : index
    %c0_129 = arith.constant 0 : index
    %207 = vector.load %arg26[%c4_127, %c0_128, %c0_129] : memref<5x50x1xf32, #tpu.memory_space<vmem>>, vector<1x50x1xf32>
    %208 = vector.shape_cast %207 : vector<1x50x1xf32> to vector<50x1xf32>
    %cst_130 = arith.constant dense<0.000000e+00> : vector<8x1xf32>
    %209 = tpu.matmul %206, %208, %cst_130 {dimension_numbers = #tpu.dot_dimension_numbers<[1], [0], [0], [1], [0, 0, 1, 1], [], []>} : vector<8x50xf32>, vector<50x1xf32>, vector<8x1xf32> -> vector<8x1xf32>
    %210 = arith.addf %204, %209 : vector<8x1xf32>
    %cst_131 = arith.constant 0.000000e+00 : f32
    %211 = vector.broadcast %cst_131 : f32 to vector<8x16xf32>
    %c0_132 = arith.constant 0 : index
    %c0_133 = arith.constant 0 : index
    %212 = vector.load %arg28[%c0_132, %c0_133] : memref<8x16xf32, #tpu.memory_space<vmem>>, vector<8x16xf32>
    tpu.vector_store %arg28[%c0_132, %c0_133], %211 {strides = array<i32>} : memref<8x16xf32, #tpu.memory_space<vmem>>, vector<8x16xf32>,
    %c0_134 = arith.constant 0 : index
    %c0_135 = arith.constant 0 : index
    %213 = vector.load %arg28[%c0_134, %c0_135] : memref<8x16xf32, #tpu.memory_space<vmem>>, vector<8x1xf32>
    tpu.vector_store %arg28[%c0_134, %c0_135], %210 {strides = array<i32>} : memref<8x16xf32, #tpu.memory_space<vmem>>, vector<8x1xf32>,
    %214 = arith.subf %15, %59 : vector<8x1xf32>
    %c0_136 = arith.constant 0 : index
    %c1_137 = arith.constant 1 : index
    %215 = vector.load %arg28[%c0_136, %c1_137] : memref<8x16xf32, #tpu.memory_space<vmem>>, vector<8x1xf32>
    tpu.vector_store %arg28[%c0_136, %c1_137], %214 {strides = array<i32>} : memref<8x16xf32, #tpu.memory_space<vmem>>, vector<8x1xf32>,
    %c0_138 = arith.constant 0 : index
    %c2_139 = arith.constant 2 : index
    %216 = vector.load %arg28[%c0_138, %c2_139] : memref<8x16xf32, #tpu.memory_space<vmem>>, vector<8x1xf32>
    tpu.vector_store %arg28[%c0_138, %c2_139], %65 {strides = array<i32>} : memref<8x16xf32, #tpu.memory_space<vmem>>, vector<8x1xf32>,
    %c0_140 = arith.constant 0 : index
    %c3_141 = arith.constant 3 : index
    %217 = vector.load %arg28[%c0_140, %c3_141] : memref<8x16xf32, #tpu.memory_space<vmem>>, vector<8x1xf32>
    tpu.vector_store %arg28[%c0_140, %c3_141], %56 {strides = array<i32>} : memref<8x16xf32, #tpu.memory_space<vmem>>, vector<8x1xf32>,
    %c0_142 = arith.constant 0 : index
    %c4_143 = arith.constant 4 : index
    %218 = vector.load %arg28[%c0_142, %c4_143] : memref<8x16xf32, #tpu.memory_space<vmem>>, vector<8x1xf32>
    tpu.vector_store %arg28[%c0_142, %c4_143], %59 {strides = array<i32>} : memref<8x16xf32, #tpu.memory_space<vmem>>, vector<8x1xf32>,
    %c0_144 = arith.constant 0 : index
    %c5 = arith.constant 5 : index
    %219 = vector.load %arg28[%c0_144, %c5] : memref<8x16xf32, #tpu.memory_space<vmem>>, vector<8x1xf32>
    tpu.vector_store %arg28[%c0_144, %c5], %50 {strides = array<i32>} : memref<8x16xf32, #tpu.memory_space<vmem>>, vector<8x1xf32>,
    %c0_145 = arith.constant 0 : index
    %c6 = arith.constant 6 : index
    %220 = vector.load %arg28[%c0_145, %c6] : memref<8x16xf32, #tpu.memory_space<vmem>>, vector<8x3xf32>
    tpu.vector_store %arg28[%c0_145, %c6], %77 {strides = array<i32>} : memref<8x16xf32, #tpu.memory_space<vmem>>, vector<8x3xf32>,
    return
  }
  func.func @transform_0(%arg0: i32) -> (i32, i32) {
    %c0_i32 = arith.constant 0 : i32
    %c0_i32_0 = arith.constant 0 : i32
    return %arg0, %c0_i32 : i32, i32
  }
  func.func @transform_1(%arg0: i32) -> (i32, i32) {
    %c0_i32 = arith.constant 0 : i32
    %c0_i32_0 = arith.constant 0 : i32
    return %arg0, %c0_i32 : i32, i32
  }
  func.func @transform_2(%arg0: i32) -> (i32, i32) {
    %c0_i32 = arith.constant 0 : i32
    %c0_i32_0 = arith.constant 0 : i32
    return %arg0, %c0_i32 : i32, i32
  }
  func.func @transform_3(%arg0: i32) -> (i32, i32) {
    %c0_i32 = arith.constant 0 : i32
    %c0_i32_0 = arith.constant 0 : i32
    return %arg0, %c0_i32 : i32, i32
  }
  func.func @transform_4(%arg0: i32) -> (i32, i32) {
    %c0_i32 = arith.constant 0 : i32
    %c0_i32_0 = arith.constant 0 : i32
    %c0_i32_1 = arith.constant 0 : i32
    return %c0_i32, %c0_i32_0 : i32, i32
  }
  func.func @transform_5(%arg0: i32) -> (i32, i32) {
    %c0_i32 = arith.constant 0 : i32
    %c0_i32_0 = arith.constant 0 : i32
    %c0_i32_1 = arith.constant 0 : i32
    return %c0_i32, %c0_i32_0 : i32, i32
  }
  func.func @transform_6(%arg0: i32) -> (i32, i32) {
    %c0_i32 = arith.constant 0 : i32
    %c0_i32_0 = arith.constant 0 : i32
    %c0_i32_1 = arith.constant 0 : i32
    return %c0_i32, %c0_i32_0 : i32, i32
  }
  func.func @transform_7(%arg0: i32) -> (i32, i32) {
    %c0_i32 = arith.constant 0 : i32
    %c0_i32_0 = arith.constant 0 : i32
    %c0_i32_1 = arith.constant 0 : i32
    return %c0_i32, %c0_i32_0 : i32, i32
  }
  func.func @transform_8(%arg0: i32) -> (i32, i32) {
    %c0_i32 = arith.constant 0 : i32
    %c0_i32_0 = arith.constant 0 : i32
    %c0_i32_1 = arith.constant 0 : i32
    return %c0_i32, %c0_i32_0 : i32, i32
  }
  func.func @transform_9(%arg0: i32) -> (i32, i32) {
    %c0_i32 = arith.constant 0 : i32
    %c0_i32_0 = arith.constant 0 : i32
    %c0_i32_1 = arith.constant 0 : i32
    return %c0_i32, %c0_i32_0 : i32, i32
  }
  func.func @transform_10(%arg0: i32) -> (i32, i32) {
    %c0_i32 = arith.constant 0 : i32
    %c0_i32_0 = arith.constant 0 : i32
    %c0_i32_1 = arith.constant 0 : i32
    return %c0_i32, %c0_i32_0 : i32, i32
  }
  func.func @transform_11(%arg0: i32) -> (i32, i32) {
    %c0_i32 = arith.constant 0 : i32
    %c0_i32_0 = arith.constant 0 : i32
    %c0_i32_1 = arith.constant 0 : i32
    return %c0_i32, %c0_i32_0 : i32, i32
  }
  func.func @transform_12(%arg0: i32) -> (i32, i32) {
    %c0_i32 = arith.constant 0 : i32
    %c0_i32_0 = arith.constant 0 : i32
    %c0_i32_1 = arith.constant 0 : i32
    return %c0_i32, %c0_i32_0 : i32, i32
  }
  func.func @transform_13(%arg0: i32) -> (i32, i32) {
    %c0_i32 = arith.constant 0 : i32
    %c0_i32_0 = arith.constant 0 : i32
    %c0_i32_1 = arith.constant 0 : i32
    return %c0_i32, %c0_i32_0 : i32, i32
  }
  func.func @transform_14(%arg0: i32) -> (i32, i32) {
    %c0_i32 = arith.constant 0 : i32
    %c0_i32_0 = arith.constant 0 : i32
    %c0_i32_1 = arith.constant 0 : i32
    return %c0_i32, %c0_i32_0 : i32, i32
  }
  func.func @transform_15(%arg0: i32) -> (i32, i32) {
    %c0_i32 = arith.constant 0 : i32
    %c0_i32_0 = arith.constant 0 : i32
    %c0_i32_1 = arith.constant 0 : i32
    return %c0_i32, %c0_i32_0 : i32, i32
  }
  func.func @transform_16(%arg0: i32) -> (i32, i32) {
    %c0_i32 = arith.constant 0 : i32
    %c0_i32_0 = arith.constant 0 : i32
    %c0_i32_1 = arith.constant 0 : i32
    return %c0_i32, %c0_i32_0 : i32, i32
  }
  func.func @transform_17(%arg0: i32) -> (i32, i32) {
    %c0_i32 = arith.constant 0 : i32
    %c0_i32_0 = arith.constant 0 : i32
    %c0_i32_1 = arith.constant 0 : i32
    return %c0_i32, %c0_i32_0 : i32, i32
  }
  func.func @transform_18(%arg0: i32) -> (i32, i32) {
    %c0_i32 = arith.constant 0 : i32
    %c0_i32_0 = arith.constant 0 : i32
    %c0_i32_1 = arith.constant 0 : i32
    return %c0_i32, %c0_i32_0 : i32, i32
  }
  func.func @transform_19(%arg0: i32) -> (i32, i32) {
    %c0_i32 = arith.constant 0 : i32
    %c0_i32_0 = arith.constant 0 : i32
    %c0_i32_1 = arith.constant 0 : i32
    return %c0_i32, %c0_i32_0 : i32, i32
  }
  func.func @transform_20(%arg0: i32) -> (i32, i32) {
    %c0_i32 = arith.constant 0 : i32
    %c0_i32_0 = arith.constant 0 : i32
    %c0_i32_1 = arith.constant 0 : i32
    return %c0_i32, %c0_i32_0 : i32, i32
  }
  func.func @transform_21(%arg0: i32) -> (i32, i32) {
    %c0_i32 = arith.constant 0 : i32
    %c0_i32_0 = arith.constant 0 : i32
    %c0_i32_1 = arith.constant 0 : i32
    return %c0_i32, %c0_i32_0 : i32, i32
  }
  func.func @transform_22(%arg0: i32) -> (i32, i32) {
    %c0_i32 = arith.constant 0 : i32
    %c0_i32_0 = arith.constant 0 : i32
    %c0_i32_1 = arith.constant 0 : i32
    return %c0_i32, %c0_i32_0 : i32, i32
  }
  func.func @transform_23(%arg0: i32) -> (i32, i32, i32) {
    %c0_i32 = arith.constant 0 : i32
    %c0_i32_0 = arith.constant 0 : i32
    %c0_i32_1 = arith.constant 0 : i32
    %c0_i32_2 = arith.constant 0 : i32
    return %c0_i32, %c0_i32_0, %c0_i32_1 : i32, i32, i32
  }
  func.func @transform_24(%arg0: i32) -> (i32, i32) {
    %c0_i32 = arith.constant 0 : i32
    %c0_i32_0 = arith.constant 0 : i32
    %c0_i32_1 = arith.constant 0 : i32
    return %c0_i32, %c0_i32_0 : i32, i32
  }
  func.func @transform_25(%arg0: i32) -> (i32, i32, i32) {
    %c0_i32 = arith.constant 0 : i32
    %c0_i32_0 = arith.constant 0 : i32
    %c0_i32_1 = arith.constant 0 : i32
    %c0_i32_2 = arith.constant 0 : i32
    return %c0_i32, %c0_i32_0, %c0_i32_1 : i32, i32, i32
  }
  func.func @transform_26(%arg0: i32) -> (i32, i32) {
    %c0_i32 = arith.constant 0 : i32
    %c0_i32_0 = arith.constant 0 : i32
    %c0_i32_1 = arith.constant 0 : i32
    return %c0_i32, %c0_i32_0 : i32, i32
  }
  func.func @transform_27(%arg0: i32) -> (i32, i32) {
    %c0_i32 = arith.constant 0 : i32
    %c0_i32_0 = arith.constant 0 : i32
    return %arg0, %c0_i32 : i32, i32
  }
  func.func @transform_28(%arg0: i32) -> (i32, i32) {
    %c0_i32 = arith.constant 0 : i32
    %c0_i32_0 = arith.constant 0 : i32
    return %c0_i32, %arg0 : i32, i32
  }
  func.func @transform_29(%arg0: i32) -> (i32, i32) {
    %c0_i32 = arith.constant 0 : i32
    %c0_i32_0 = arith.constant 0 : i32
    return %c0_i32, %arg0 : i32, i32
  }
  func.func @transform_30(%arg0: i32) -> (i32, i32) {
    %c0_i32 = arith.constant 0 : i32
    %c0_i32_0 = arith.constant 0 : i32
    return %c0_i32, %arg0 : i32, i32
  }
}

</mosaic_0001>

<bundles_post_ra>
// kernel: _forward_impl.3
= control target key start
LH: loop header
LB: loop body
LE: loop exit
PB: predicated region body
PF: predicated region fallthrough
CT: control target
= control target key end

     0   :  { %13 = vsyncpa [#allocation3], 0  ;;  %v280_v1 = vmov 5   ;;  %v281_v2 = vmov 6   ;;  %s406_s0 = inlined_call_operand.vmem [shape: f32[8,16], index: 0, kind: input, shape index: {}]   ;;  %s407_s1 = inlined_call_operand.vmem [shape: f32[3,8], index: 1, kind: input, shape index: {}]   ;;  %s408_s2 = inlined_call_operand.vmem [shape: f32[3,8], index: 2, kind: input, shape index: {}]   ;;  %s409_s3 = inlined_call_operand.vmem [shape: f32[3,8], index: 3, kind: input, shape index: {}]   ;;  %s410_s4 = inlined_call_operand.vmem [shape: f32[1,8], index: 4, kind: input, shape index: {}]   ;;  %s411_s5 = inlined_call_operand.hbm [shape: f32[8,8], index: 5, kind: output, shape index: {0}]   ;;  %s412_s6 = inlined_call_operand.hbm [shape: f32[8,8], index: 6, kind: output, shape index: {1}]   ;;  %s413_s7 = inlined_call_operand.vmem [shape: f32[8,1], index: 7, kind: output, shape index: {2}]  }
   0x1   :  { %v25_v0 = vld [vmem:[%s406_s0] sm:$0xff]  ;;  %216 = vset.pattern.permute.xlu0 %v280_v1  ;;  %218 = vset.pattern.permute.xlu1 %v281_v2 }
   0x2   :  { %14 = vsyncpa [#allocation5], 0  ;;  %139 = vperm.xlu0 %216, %v25_v0   ;;  %46 = vperm.xlu1 %218, %v25_v0   ;;  %v282_v3 = vmov 4   ;;  %v283_v4 = vmov 7   ;;  %v284_v5 = vmov 8   ;;  %vm151_vm0 = vcmask 7168  }
   0x3   :  { %v285_v6 = vmov 0.0   ;;  %v207_v7 = vld [vmem:[%s410_s4] ss:$0 sm:$0xff]  ;;  %vm126_vm1 = vcmask 64512   ;;  %v199_v13 = vld [vmem:[%s407_s1 + $0x1] ss:$0 sm:$0xff] }
   0x4   :  { %152 = vst.msk [vmem:[%s413_s7] sm:$0xff] %vm151_vm0, %v285_v6  ;;  %v195_v12 = vld [vmem:[%s407_s1] ss:$0 sm:$0xff]  ;;  %v203_v14 = vld [vmem:[%s407_s1 + $0x2] ss:$0 sm:$0xff] }
   0x5   :  { %v196_v15 = vld [vmem:[%s408_s2] ss:$0 sm:$0xff]  ;;  %v200_v18 = vld [vmem:[%s408_s2 + $0x1] ss:$0 sm:$0xff]  ;;  %v204_v20 = vld [vmem:[%s408_s2 + $0x2] ss:$0 sm:$0xff] }
   0x6   :  { %217 = vset.pattern.permute.xlu0 %v282_v3  ;;  %219 = vset.pattern.permute.xlu1 %v283_v4  ;;  %v197_v34 = vld [vmem:[%s409_s3] ss:$0 sm:$0xff]  ;;  %v201_v35 = vld [vmem:[%s409_s3 + $0x1] ss:$0 sm:$0xff]  ;;  %v205_v36 = vld [vmem:[%s409_s3 + $0x2] ss:$0 sm:$0xff] }
   0x7   :  { %29 = vperm.xlu0 %217, %v25_v0   ;;  %72 = vperm.xlu1 %219, %v25_v0   ;;  %s286_s3 = smov [#allocation4]  }
   0x8   :  { %s179_s21 = sshll.u32 %s286_s3, 4  ;;  %s180_s21 = int_to_ptr.vmem [resolvable:$true] %s179_s21 }
   0x9   :  { %s232_s22 = scalar_lea.vmem %s180_s21, 128  ;;  %p237_p1 = scmp.lt.s32.totalorder %s180_s21, %s180_s21 }
   0xa   :  { %p233_p0 = scmp.ne.s32.totalorder %s180_s21, %s232_s22  ;;  %p238_p2 = scmp.lt.s32.totalorder %s232_s22, %s232_s22 }
   0xb   :  { %220 = vset.pattern.permute.xlu1 %v284_v5  ;;  %221 = vset.pattern.permute.xlu0 %v280_v1 }
   0xc   :  { %98 = vperm.xlu1 %220, %v25_v0   ;;  %p239_p3 = por %p238_p2, %p237_p1 }
   0xe   :  { %p240_p4 = pnand %p239_p3, %p233_p0 }
  0x81   :  { %v140_v8 = vpop.permute.xlu0 %139  ;;  %v47_v9 = vpop.permute.xlu1 %46 }
  0x82   :  { %v142_v10 = vsub.f32 %v207_v7, %v140_v8 }
  0x84   :  { %v143_v11 = vmul.f32 %v142_v10, %v142_v10 }
  0x86   :  { %v144_v16 = vsel %vm126_vm1, %v143_v11, 0.0  ;;  %v30_v17 = vpop.permute.xlu0 %29  ;;  %v73_v19 = vpop.permute.xlu1 %72 }
  0x87   :  { %145 = vadd.xlane.f32.xlu0 %v144_v16  ;;  %v36_v21 = vsub.f32 %v30_v17, %v195_v12  ;;  %v62_v22 = vsub.f32 %v30_v17, %v199_v13  ;;  %v88_v23 = vsub.f32 %v30_v17, %v203_v14 }
  0x89   :  { %v42_v24 = vmul.f32 %v196_v15, %v36_v21  ;;  %v68_v25 = vmul.f32 %v200_v18, %v62_v22  ;;  %v94_v26 = vmul.f32 %v204_v20, %v88_v23 }
  0x8b   :  { %v43_v27 = vmul.f32 0.5, %v42_v24  ;;  %v69_v28 = vmul.f32 0.5, %v68_v25  ;;  %v95_v29 = vmul.f32 0.5, %v94_v26  ;;  %v99_v30 = vpop.permute.xlu1 %98 }
  0x8d   :  { %v44_v31 = vmul.f32 %v43_v27, %v42_v24  ;;  %v70_v32 = vmul.f32 %v69_v28, %v68_v25  ;;  %v96_v33 = vmul.f32 %v95_v29, %v94_v26 }
  0x8f   :  { %v49_v37 = vsub.f32 %v47_v9, %v44_v31  ;;  %v75_v38 = vsub.f32 %v73_v19, %v70_v32  ;;  %v101_v39 = vsub.f32 %v99_v30, %v96_v33 }
  0x91   :  { %v55_v40 = vsub.f32 %v49_v37, %v197_v34  ;;  %v81_v41 = vsub.f32 %v75_v38, %v201_v35  ;;  %v107_v42 = vsub.f32 %v101_v39, %v205_v36 }
  0x93   :  { %v198_v43 = vadd.f32 -0.9189385, %v55_v40  ;;  %v202_v44 = vadd.f32 -0.9189385, %v81_v41  ;;  %v206_v45 = vadd.f32 -0.9189385, %v107_v42 }
  0x95   :  { %v109_v46 = vmax.f32 %v198_v43, %v202_v44 }
  0x97   :  { %v110_v47 = vmax.f32 %v109_v46, %v206_v45 }
  0x99   :  { %v111_v48 = vsub.f32 %v198_v43, %v110_v47  ;;  %v115_v49 = vsub.f32 %v202_v44, %v110_v47  ;;  %v119_v50 = vsub.f32 %v206_v45, %v110_v47 }
  0x9b   :  { %v112_v51 = vmul.f32 1.442695, %v111_v48  ;;  %v116_v52 = vmul.f32 1.442695, %v115_v49  ;;  %v120_v53 = vmul.f32 1.442695, %v119_v50 }
  0x9d   :  { %222 = vpow2.f32 %v112_v51 }
  0x9e   :  { %224 = vpow2.f32 %v116_v52 }
  0x9f   :  { %226 = vpow2.f32 %v120_v53 }
  0xa7   :  { %v223_v54 = vpop.eup %222 }
  0xa8   :  { %v225_v55 = vpop.eup %224 }
  0xa9   :  { %v227_v56 = vpop.eup %226  ;;  %v118_v57 = vadd.f32 %v225_v55, %v223_v54 }
  0xab   :  { %v122_v58 = vadd.f32 %v227_v56, %v118_v57 }
  0xad   :  { %228 = vlog2.f32 %v122_v58 }
  0xb7   :  { %v229_v59 = vpop.eup %228 }
  0xb8   :  { %v124_v60 = vmul.f32 0.6931472, %v229_v59 }
  0xba   :  { %v125_v61 = vadd.f32 %v124_v60, %v110_v47 }
  0xbc   :  { %127 = vst.msk [vmem:[#allocation4] sm:$0xff] %vm126_vm1, %v125_v61  ;;  %v128_v62 = vmul.f32 1.442695, %v125_v61 }
  0xbd   :  { %243 = shalt.err (!%p240_p4)
}
  0xbe   :  { %s244_s25 = scalar_lea.hbm %s412_s6, 128 }
  0xbf   :  { %p245_p5 = scmp.ne.s32.totalorder %s412_s6, %s244_s25  ;;  %p248_p6 = scmp.lt.u32.totalorder %s244_s25, %s412_s6 }
  0xc1   :  { %p250_p7 = pnand %p248_p6, %p245_p5 }
  0xc3   :  { %253 = shalt.err (!%p250_p7)
}
  0xc4   :  { %182 = dma.vmem_to_hbm [thread:$0]  %s180_s21, 128, %s412_s6, [#allocation5]   ;;  %230 = vpow2.f32 %v128_v62 }
  0xc5   :  { %s287_s8 = smov [#allocation2]  }
  0xc6   :  { %s169_s9 = sshll.u32 %s287_s8, 4  ;;  %s170_s9 = int_to_ptr.vmem [resolvable:$true] %s169_s9 }
  0xc7   :  { %s254_s10 = scalar_lea.vmem %s170_s9, 128  ;;  %p259_p9 = scmp.lt.s32.totalorder %s170_s9, %s170_s9 }
  0xc8   :  { %p255_p8 = scmp.ne.s32.totalorder %s170_s9, %s254_s10  ;;  %p260_p10 = scmp.lt.s32.totalorder %s254_s10, %s254_s10 }
  0xca   :  { %p261_p11 = por %p260_p10, %p259_p9 }
  0xcc   :  { %p262_p12 = pnand %p261_p11, %p255_p8 }
  0xce   :  { %v231_v63 = vpop.eup %230 }
  0xcf   :  { %130 = vst.msk [vmem:[#allocation2] sm:$0xff] %vm126_vm1, %v231_v63 }
  0xd0   :  { %265 = shalt.err (!%p262_p12)
}
  0xd1   :  { %s266_s13 = scalar_lea.hbm %s411_s5, 128 }
  0xd2   :  { %p267_p13 = scmp.ne.s32.totalorder %s411_s5, %s266_s13  ;;  %p270_p0 = scmp.lt.u32.totalorder %s266_s13, %s411_s5 }
  0xd4   :  { %p272_p1 = pnand %p270_p0, %p267_p13 }
  0xd6   :  { %275 = shalt.err (!%p272_p1)
}
  0xd7   :  { %172 = dma.vmem_to_hbm [thread:$0]  %s170_s9, 128, %s411_s5, [#allocation3]   ;;  %v153_v0 = vld [vmem:[%s413_s7] sm:$0xff] }
 0x114   :  { %v146_v1 = vpop.xlane.xlu0 %145 }
 0x115   :  { %v154_v2 = vadd.f32 %v153_v0, %v146_v1 }
 0x117   :  { %156 = vst.msk [vmem:[%s413_s7] sm:$0xff] %vm151_vm0, %v154_v2 }
 0x11e   :  { %v160_v3 = vld [vmem:[%s413_s7] sm:$0xff] }
 0x11f   :  { %v161_v4 = vmul.f32 0.125, %v160_v3 }
 0x121   :  { %162 = vst.msk [vmem:[%s413_s7] sm:$0xff] %vm151_vm0, %v161_v4 }
 0x122   :  { %276 = dma.done.wait [#allocation3], 128  }
 0x123   :  { %277 = vsyncadd [#allocation3], 4294967168 }
 0x124   :  { %278 = dma.done.wait [#allocation5], 128  }
 0x125   :  { %279 = vsyncadd [#allocation5], 4294967168 }
 0x126   :  { %193 = vsyncpa [#allocation3], 1 }
 0x127   :  { %194 = vsyncpa [#allocation5], 1 }

// kernel: _forward_impl.2
= control target key start
LH: loop header
LB: loop body
LE: loop exit
PB: predicated region body
PF: predicated region fallthrough
CT: control target
= control target key end

     0   :  { %v2920_v0 = vmov 0   ;;  %s2921_s3 = smov 1   ;;  %s2922_s7 = smov 2   ;;  %v2923_v1 = vmov 0.0|0.0   ;;  %vm2924_vm0 = vmmov 0   ;;  %v2925_v2 = vmov 0.0   ;;  %s3466_s0 = inlined_call_operand.smem [shape: u32[31], index: -1, kind: input, shape index: {}] }
   0x1   :  { %2910 = vset.pattern.permute.xlu0 %v2920_v0  ;;  %s1984_s6 = sld [smem:[%s3466_s0 + %s2921_s3]]   ;;  %2651 = vmatprep.subr.bf16.mxu0 %v2923_v1  ;;  %s2926_s14 = smov 4   ;;  %vm135_vm1 = vcmask 130048   ;;  %vm228_vm2 = vcmask 1041408   ;;  %v311_v43 = vlaneseq  ;;  %vm224_vm3 = vcmask 408576  }
   0x2   :  { %s1985_s10 = sld [smem:[%s3466_s0 + %s2922_s7]]   ;;  %2294 = vmatprep.mubr.msk.f32.mxu0 %vm2924_vm0, %v2925_v2  ;;  %2654 = vmatprep.subr.bf16.mxu1 %v2923_v1  ;;  %s2927_s18 = smov 27   ;;  %vm802_vm4 = vcmask 23552   ;;  %vm975_vm5 = vcmask 59392   ;;  %vm1930_vm6 = vcmask 7168   ;;  %vm1937_vm7 = vcmask 15368  }
   0x3   :  { %s1_s13 = sld [smem:[%s3466_s0]]   ;;  %2311 = vmatprep.mubr.msk.f32.mxu1 %vm2924_vm0, %v2925_v2  ;;  %2911 = vset.pattern.permute.xlu1 %v2920_v0  ;;  %s2928_s22 = smov 10   ;;  %v312_v44 = vshrl.u32 %v311_v43, 7  ;;  %vm1943_vm8 = vcmask 23568   ;;  %vm1949_vm9 = vcmask 31768   ;;  %vm1954_vm10 = vcmask 39968  }
   0x4   :  { %s1987_s17 = sld [smem:[%s3466_s0 + %s2926_s14]]   ;;  %s2929_s26 = smov 6   ;;  %vm1960_vm11 = vcmask 48168   ;;  %vm1966_vm12 = vcmask 72752  }
   0x5   :  { %s2983_s21 = sld [smem:[%s3466_s0 + %s2927_s18]]   ;;  %s2930_s30 = smov 8   ;;  %v313_v45 = vsub.s32 0, %v312_v44  ;;  %v323_v46 = vsub.s32 1, %v312_v44 }
   0x6   :  { %s2988_s25 = sld [smem:[%s3466_s0 + %s2928_s22]]   ;;  %s2931_s5 = smov 9  }
   0x7   :  { %v2990_v3 = vld [vmem:[%s1984_s6] sm:$0xff]  ;;  %s3012_s29 = sld [smem:[%s3466_s0 + %s2929_s26]]   ;;  %s2933_s15 = smov 12  }
   0x8   :  { %308 = vperm.xlu0 %2910, %v2990_v3   ;;  %v304_v4 = vld [vmem:[%s1985_s10] sm:$0xff]  ;;  %s1991_s4 = sld [smem:[%s3466_s0 + %s2930_s30]]   ;;  %s2932_s10 = smov 5  }
   0x9   :  { %v125_v10 = vld [vmem:[%s1_s13] sm:$0xff]  ;;  %s1992_s9 = sld [smem:[%s3466_s0 + %s2931_s5]]   ;;  %s2934_s19 = smov 14  }
   0xa   :  { %v126_v5 = vld [vmem:[%s1987_s17] sm:$0xff]  ;;  %v127_v6 = vld [vmem:[%s1987_s17 + $0x8] sm:$0xff]  ;;  %s1988_s13 = sld [smem:[%s3466_s0 + %s2932_s10]]   ;;  %s2935_s24 = smov 11  }
   0xb   :  { %v2652_v7 = vpack.c.bf16 %v127_v6, %v126_v5  ;;  %1929 = vst.msk [vmem:[%s2983_s21] sm:$0xff] %vm135_vm1, %v2925_v2  ;;  %s3055_s18 = sld [smem:[%s3466_s0 + %s2933_s15]]   ;;  %s2939_s15 = smov 13  }
   0xc   :  { %v336_v8 = vld [vmem:[%s2988_s25] sm:$0xff]  ;;  %v337_v9 = vld [vmem:[%s2988_s25 + $0x8] sm:$0xff]  ;;  %318 = vperm.xlu0 %2910, %v304_v4   ;;  %v338_v12 = vld [vmem:[%s2988_s25 + $0x10] sm:$0xff]  ;;  %s3087_s23 = sld [smem:[%s3466_s0 + %s2934_s19]]   ;;  %s2940_s19 = smov 18  }
   0xd   :  { %2653 = vmatpush3.bf16.msra.mxu0 %v2652_v7  ;;  %v2664_v11 = vpack.c.bf16 %v337_v9, %v336_v8  ;;  %v339_v13 = vld [vmem:[%s2988_s25 + $0x18] sm:$0xff]  ;;  %v340_v15 = vld [vmem:[%s2988_s25 + $0x20] sm:$0xff]  ;;  %v341_v16 = vld [vmem:[%s2988_s25 + $0x28] sm:$0xff]  ;;  %s1994_s28 = sld [smem:[%s3466_s0 + %s2935_s24]]   ;;  %s2941_s24 = smov 23  }
   0xe   :  { %2663 = vmatprep.subr.bf16.mxu0 %v2923_v1  ;;  %v2667_v14 = vpack.c.bf16 %v339_v13, %v338_v12  ;;  %v2670_v17 = vpack.c.bf16 %v341_v16, %v340_v15  ;;  %v342_v18 = vld [vmem:[%s2988_s25 + $0x30] sm:$0xff]  ;;  %v343_v19 = vld [vmem:[%s2988_s25 + $0x38] sm:$0xff]  ;;  %v344_v21 = vld [vmem:[%s2988_s25 + $0x40] sm:$0xff]  ;;  %s2950_s6 = smov 20   ;;  %s2951_s12 = smov 25  }
   0xf   :  { %v2673_v20 = vpack.c.bf16 %v343_v19, %v342_v18  ;;  %v345_v22 = vld [vmem:[%s2988_s25 + $0x48] sm:$0xff]  ;;  %v210_v23 = vld [vmem:[%s3012_s29] sm:$0xff]  ;;  %v212_v25 = vld [vmem:[%s3012_s29 + $0x10] sm:$0xff]  ;;  %s2003_s11 = sld [smem:[%s3466_s0 + %s2950_s6]]  }
  0x10   :  { %2295 = vmatmul.mubr.msk.f32.vlgmr.msra.gmra.mrb[0].mxu0 %vm135_vm1, %v125_v10  ;;  %v211_v24 = vld [vmem:[%s3012_s29 + $0x8] sm:$0xff]  ;;  %v2676_v26 = vpack.c.bf16 %v345_v22, %v344_v21  ;;  %v213_v28 = vld [vmem:[%s3012_s29 + $0x18] sm:$0xff]  ;;  %v346_v29 = vld [vmem:[%s2988_s25 + $0x50] sm:$0xff]  ;;  %s3360_s16 = sld [smem:[%s3466_s0 + %s2951_s12]]  }
  0x11   :  { %2665 = vmatpush3.bf16.msra.mxu0 %v2664_v11  ;;  %2346 = vmatprep.mubr.msk.f32.mxu0 %vm2924_vm0, %v2925_v2  ;;  %v2655_v27 = vpack.c.bf16 %v211_v24, %v210_v23  ;;  %v347_v30 = vld [vmem:[%s2988_s25 + $0x58] sm:$0xff]  ;;  %v2658_v31 = vpack.c.bf16 %v213_v28, %v212_v25  ;;  %v348_v33 = vld [vmem:[%s2988_s25 + $0x60] sm:$0xff]  ;;  %v349_v34 = vld [vmem:[%s2988_s25 + $0x68] sm:$0xff] }
  0x12   :  { %2666 = vmatprep.subr.bf16.mxu0 %v2923_v1  ;;  %v2679_v32 = vpack.c.bf16 %v347_v30, %v346_v29  ;;  %v2682_v35 = vpack.c.bf16 %v349_v34, %v348_v33  ;;  %v350_v36 = vld [vmem:[%s2988_s25 + $0x70] sm:$0xff]  ;;  %v351_v37 = vld [vmem:[%s2988_s25 + $0x78] sm:$0xff]  ;;  %v214_v39 = vld [vmem:[%s3012_s29 + $0x20] sm:$0xff] }
  0x13   :  { %2656 = vmatpush3.bf16.msra.mxu1 %v2655_v27  ;;  %v2685_v38 = vpack.c.bf16 %v351_v37, %v350_v36  ;;  %v215_v40 = vld [vmem:[%s3012_s29 + $0x28] sm:$0xff]  ;;  %v216_v42 = vld [vmem:[%s3012_s29 + $0x30] sm:$0x3]  ;;  %v305_v47 = vld [vmem:[%s1991_s4] sm:$0x3]  ;;  %s2936_s29 = smov 16  }
  0x14   :  { %2657 = vmatprep.subr.bf16.mxu1 %v2923_v1  ;;  %v2661_v41 = vpack.c.bf16 %v215_v40, %v214_v39  ;;  %v314_v49 = vrot.slane %v305_v47, %v313_v45  ;;  %v324_v50 = vrot.slane %v305_v47, %v323_v46  ;;  %v2019_v54 = vld [vmem:[%s1992_s9] ss:$0 sm:$0xff]  ;;  %v431_v60 = vld [vmem:[%s3055_s18 + $0x8] sm:$0xff]  ;;  %v432_v5 = vld [vmem:[%s3055_s18 + $0x10] sm:$0xff]  ;;  %s3115_s2 = sld [smem:[%s3466_s0 + %s2936_s29]]   ;;  %s2937_s4 = smov 15  }
  0x15   :  { %2668 = vmatpush3.bf16.msra.mxu0 %v2667_v14  ;;  %v2014_v58 = vld [vmem:[%s1988_s13] ss:$0 sm:$0xff]  ;;  %v433_v6 = vld [vmem:[%s3055_s18 + $0x18] sm:$0xff]  ;;  %v435_v9 = vld [vmem:[%s3055_s18 + $0x28] sm:$0xff]  ;;  %s1998_s8 = sld [smem:[%s3466_s0 + %s2937_s4]]   ;;  %s2938_s9 = smov 7  }
  0x16   :  { %2669 = vmatprep.subr.bf16.mxu0 %v2923_v1  ;;  %v430_v59 = vld [vmem:[%s3055_s18] sm:$0xff]  ;;  %v2691_v7 = vpack.c.bf16 %v433_v6, %v432_v5  ;;  %v436_v11 = vld [vmem:[%s3055_s18 + $0x30] sm:$0xff]  ;;  %v437_v12 = vld [vmem:[%s3055_s18 + $0x38] sm:$0xff]  ;;  %s1990_s13 = sld [smem:[%s3466_s0 + %s2938_s9]]   ;;  %s2942_s29 = smov 19  }
  0x17   :  { %2659 = vmatpush3.bf16.msra.mxu1 %v2658_v31  ;;  %v2688_v0 = vpack.c.bf16 %v431_v60, %v430_v59  ;;  %v434_v8 = vld [vmem:[%s3055_s18 + $0x20] sm:$0xff]  ;;  %v2697_v13 = vpack.c.bf16 %v437_v12, %v436_v11  ;;  %v439_v15 = vld [vmem:[%s3055_s18 + $0x48] sm:$0xff]  ;;  %v441_v18 = vld [vmem:[%s3055_s18 + $0x58] sm:$0xff]  ;;  %s2943_s4 = smov 21   ;;  %s2944_s9 = smov 17  }
  0x18   :  { %2660 = vmatprep.subr.bf16.mxu1 %v2923_v1  ;;  %v2694_v10 = vpack.c.bf16 %v435_v9, %v434_v8  ;;  %v438_v14 = vld [vmem:[%s3055_s18 + $0x40] sm:$0xff]  ;;  %v443_v21 = vld [vmem:[%s3055_s18 + $0x68] sm:$0xff]  ;;  %v444_v23 = vld [vmem:[%s3055_s18 + $0x70] sm:$0xff] }
  0x19   :  { %2671 = vmatpush3.bf16.msra.mxu0 %v2670_v17  ;;  %v2700_v16 = vpack.c.bf16 %v439_v15, %v438_v14  ;;  %v440_v17 = vld [vmem:[%s3055_s18 + $0x50] sm:$0xff]  ;;  %v445_v24 = vld [vmem:[%s3055_s18 + $0x78] sm:$0xff]  ;;  %v525_v27 = vld [vmem:[%s3087_s23 + $0x8] sm:$0xff] }
  0x1a   :  { %2672 = vmatprep.subr.bf16.mxu0 %v2923_v1  ;;  %v2703_v19 = vpack.c.bf16 %v441_v18, %v440_v17  ;;  %v2709_v25 = vpack.c.bf16 %v445_v24, %v444_v23  ;;  %v526_v29 = vld [vmem:[%s3087_s23 + $0x10] sm:$0xff]  ;;  %v527_v30 = vld [vmem:[%s3087_s23 + $0x18] sm:$0xff]  ;;  %v529_v33 = vld [vmem:[%s3087_s23 + $0x28] sm:$0xff] }
  0x1b   :  { %2662 = vmatpush3.bf16.msra.mxu1 %v2661_v41  ;;  %v2715_v31 = vpack.c.bf16 %v527_v30, %v526_v29  ;;  %v531_v36 = vld [vmem:[%s3087_s23 + $0x38] sm:$0xff]  ;;  %v533_v39 = vld [vmem:[%s3087_s23 + $0x48] sm:$0xff]  ;;  %v534_v41 = vld [vmem:[%s3087_s23 + $0x50] sm:$0xff] }
  0x1c   :  { %2309 = vmatprep.subr.mxu1 %v2925_v2  ;;  %v536_v44 = vld [vmem:[%s3087_s23 + $0x60] sm:$0xff]  ;;  %v537_v45 = vld [vmem:[%s3087_s23 + $0x68] sm:$0xff]  ;;  %v627_v6 = vld [vmem:[%s3115_s2 + $0x50] sm:$0xff] }
  0x1d   :  { %2674 = vmatpush3.bf16.msra.mxu0 %v2673_v20  ;;  %v442_v20 = vld [vmem:[%s3055_s18 + $0x60] sm:$0xff]  ;;  %v2730_v46 = vpack.c.bf16 %v537_v45, %v536_v44  ;;  %v622_v59 = vld [vmem:[%s3115_s2 + $0x28] sm:$0xff]  ;;  %v631_v12 = vld [vmem:[%s3115_s2 + $0x70] sm:$0xff]  ;;  %s1996_s18 = sld [smem:[%s3466_s0 + %s2939_s15]]   ;;  %s2945_s15 = smov 3  }
  0x1e   :  { %2675 = vmatprep.subr.bf16.mxu0 %v2923_v1  ;;  %v2706_v22 = vpack.c.bf16 %v443_v21, %v442_v20  ;;  %v2020_v47 = vld [vmem:[%s1994_s28] ss:$0 sm:$0xff]  ;;  %v538_v17 = vld [vmem:[%s3087_s23 + $0x70] sm:$0xff]  ;;  %v539_v18 = vld [vmem:[%s3087_s23 + $0x78] sm:$0xff]  ;;  %v67_v20 = vstv %s1998_s8  ;;  %s3164_s28 = sld [smem:[%s3466_s0 + %s2941_s24]]   ;;  %s2947_s24 = smov 22  }
  0x1f   :  { %2310 = vmatpush3.msk.msra.mxu1 %vm228_vm2, %v216_v42  ;;  %v535_v42 = vld [vmem:[%s3087_s23 + $0x58] sm:$0xff]  ;;  %v629_v9 = vld [vmem:[%s3115_s2 + $0x60] sm:$0xff]  ;;  %68 = vst [vmem:[#allocation2] sm:$0x1] %v67_v20  ;;  %s2004_s8 = sld [smem:[%s3466_s0 + %s2943_s4]]  }
  0x20   :  { %2687 = vmatprep.subr.bf16.mxu1 %v2923_v1  ;;  %v2727_v43 = vpack.c.bf16 %v535_v42, %v534_v41  ;;  %v2016_v21 = vld [vmem:[%s1990_s13] ss:$0 sm:$0xff]  ;;  %s2000_s13 = sld [smem:[%s3466_s0 + %s2944_s9]]  }
  0x21   :  { %2677 = vmatpush3.bf16.msra.mxu0 %v2676_v26  ;;  %v524_v26 = vld [vmem:[%s3087_s23] sm:$0xff] }
  0x22   :  { %2678 = vmatprep.subr.bf16.mxu0 %v2923_v1  ;;  %v2712_v28 = vpack.c.bf16 %v525_v27, %v524_v26 }
  0x24   :  { %v1044_v41 = vld [vmem:[%s3164_s28 + $0x10] sm:$0xff]  ;;  %v1045_v42 = vld [vmem:[%s3164_s28 + $0x18] sm:$0xff]  ;;  %v1046_v45 = vld [vmem:[%s3164_s28 + $0x20] sm:$0xff] }
  0x25   :  { %2680 = vmatpush3.bf16.msra.mxu0 %v2679_v32  ;;  %v528_v32 = vld [vmem:[%s3087_s23 + $0x20] sm:$0xff]  ;;  %v2772_v44 = vpack.c.bf16 %v1045_v42, %v1044_v41 }
  0x26   :  { %2681 = vmatprep.subr.bf16.mxu0 %v2923_v1  ;;  %v2718_v34 = vpack.c.bf16 %v529_v33, %v528_v32  ;;  %v1042_v33 = vld [vmem:[%s3164_s28] sm:$0xff] }
  0x29   :  { %2683 = vmatpush3.bf16.msra.mxu0 %v2682_v35  ;;  %v530_v35 = vld [vmem:[%s3087_s23 + $0x30] sm:$0xff] }
  0x2a   :  { %2684 = vmatprep.subr.bf16.mxu0 %v2923_v1  ;;  %v2721_v37 = vpack.c.bf16 %v531_v36, %v530_v35 }
  0x2d   :  { %2686 = vmatpush3.bf16.msra.mxu0 %v2685_v38  ;;  %v532_v38 = vld [vmem:[%s3087_s23 + $0x40] sm:$0xff]  ;;  %s3159_s23 = sld [smem:[%s3466_s0 + %s2940_s19]]   ;;  %s2946_s19 = smov 26  }
  0x2e   :  { %2711 = vmatprep.subr.bf16.mxu0 %v2923_v1  ;;  %v2724_v40 = vpack.c.bf16 %v533_v39, %v532_v38 }
  0x33   :  { %v719_v23 = vld [vmem:[%s3159_s23] sm:$0xff]  ;;  %v720_v24 = vld [vmem:[%s3159_s23 + $0x8] sm:$0xff]  ;;  %v721_v30 = vld [vmem:[%s3159_s23 + $0x10] sm:$0xff] }
  0x34   :  { %v2760_v29 = vpack.c.bf16 %v720_v24, %v719_v23  ;;  %v722_v32 = vld [vmem:[%s3159_s23 + $0x18] sm:$0xff]  ;;  %v723_v39 = vld [vmem:[%s3159_s23 + $0x20] sm:$0xff] }
  0x35   :  { %v2763_v36 = vpack.c.bf16 %v722_v32, %v721_v30 }
  0x87   :  { %v309_v48 = vpop.permute.xlu0 %308 }
  0x88   :  { %v315_v52 = vmul.f32 %v314_v49, %v309_v48  ;;  %v617_v48 = vld [vmem:[%s3115_s2] sm:$0xff]  ;;  %v618_v49 = vld [vmem:[%s3115_s2 + $0x8] sm:$0xff] }
  0x8b   :  { %v319_v51 = vpop.permute.xlu0 %318 }
  0x8c   :  { %v325_v53 = vmul.f32 %v324_v50, %v319_v51 }
  0x8e   :  { %v326_v55 = vadd.f32 %v325_v53, %v315_v52  ;;  %v2736_v53 = vpack.c.bf16 %v618_v49, %v617_v48  ;;  %v725_v48 = vld [vmem:[%s3159_s23 + $0x30] sm:$0x3] }
  0x8f   :  { %v1048_v49 = vld [vmem:[%s3164_s28 + $0x30] sm:$0x3] }
  0x90   :  { %v334_v56 = vadd.f32 %v2019_v54, %v326_v55  ;;  %v619_v55 = vld [vmem:[%s3115_s2 + $0x10] sm:$0xff] }
  0x92   :  { %v335_v57 = vmax.f32 %v334_v56, 0.0  ;;  %v620_v56 = vld [vmem:[%s3115_s2 + $0x18] sm:$0xff] }
  0x94   :  { %2347 = vmatmul.mubr.f32.vlgmr.msra.gmra.mrb[2].mxu0 %v335_v57  ;;  %v2739_v57 = vpack.c.bf16 %v620_v56, %v619_v55  ;;  %v2043_v56 = vld [vmem:[%s3164_s28 + $0x50] sm:$0xff] }
  0x95   :  { %2416 = vmatprep.mubr.msk.f32.mxu0 %vm2924_vm0, %v2925_v2  ;;  %2713 = vmatpush3.bf16.msra.mxu0 %v2712_v28 }
  0x96   :  { %2714 = vmatprep.subr.bf16.mxu0 %v2923_v1 }
  0x99   :  { %2716 = vmatpush3.bf16.msra.mxu0 %v2715_v31 }
  0x9a   :  { %2717 = vmatprep.subr.bf16.mxu0 %v2923_v1 }
  0x9d   :  { %2719 = vmatpush3.bf16.msra.mxu0 %v2718_v34  ;;  %v1043_v34 = vld [vmem:[%s3164_s28 + $0x8] sm:$0xff] }
  0x9e   :  { %2720 = vmatprep.subr.bf16.mxu0 %v2923_v1  ;;  %v2769_v38 = vpack.c.bf16 %v1043_v34, %v1042_v33 }
  0xa1   :  { %2722 = vmatpush3.bf16.msra.mxu0 %v2721_v37 }
  0xa2   :  { %2723 = vmatprep.subr.bf16.mxu0 %v2923_v1 }
  0xa5   :  { %2725 = vmatpush3.bf16.msra.mxu0 %v2724_v40  ;;  %v724_v40 = vld [vmem:[%s3159_s23 + $0x28] sm:$0xff]  ;;  %s2009_s23 = sld [smem:[%s3466_s0 + %s2946_s19]]   ;;  %s2953_s19 = smov 24  }
  0xa6   :  { %2726 = vmatprep.subr.bf16.mxu0 %v2923_v1 }
  0xa9   :  { %2728 = vmatpush3.bf16.msra.mxu0 %v2727_v43  ;;  %v2766_v43 = vpack.c.bf16 %v724_v40, %v723_v39 }
  0xaa   :  { %2729 = vmatprep.subr.bf16.mxu0 %v2923_v1 }
  0xab   :  { %v2080_v30 = vld [vmem:[%s2009_s23 + $0x4] ss:$0 sm:$0xff] }
  0xad   :  { %2731 = vmatpush3.bf16.msra.mxu0 %v2730_v46  ;;  %v1047_v46 = vld [vmem:[%s3164_s28 + $0x28] sm:$0xff] }
  0xae   :  { %2732 = vmatprep.subr.bf16.mxu0 %v2923_v1 }
  0xe3   :  { %v205_v61 = vpop.f32.mrb[0].mxu0 }
  0xe4   :  { %v206_v62 = vadd.f32 %v2014_v58, %v205_v61  ;;  %v2296_v63 = vpop.f32.mrb[1].mxu0  ;;  %v621_v58 = vld [vmem:[%s3115_s2 + $0x20] sm:$0xff]  ;;  %v623_v61 = vld [vmem:[%s3115_s2 + $0x30] sm:$0xff] }
  0xe5   :  { %v2742_v60 = vpack.c.bf16 %v622_v59, %v621_v58  ;;  %v2044_v58 = vld [vmem:[%s3164_s28 + $0x58] sm:$0xff]  ;;  %v2045_v59 = vld [vmem:[%s3164_s28 + $0x60] sm:$0xff] }
  0xe6   :  { %v209_v4 = vmax.f32 %v206_v62, 0.0  ;;  %v624_v62 = vld [vmem:[%s3115_s2 + $0x38] sm:$0xff] }
  0xe7   :  { %v2745_v63 = vpack.c.bf16 %v624_v62, %v623_v61 }
  0xe8   :  { %2312 = vmatmul.mubr.msk.f32.vlgmr.msra.gmra.mrb[0].mxu1 %vm224_vm3, %v209_v4  ;;  %v626_v4 = vld [vmem:[%s3115_s2 + $0x48] sm:$0xff] }
  0xe9   :  { %2689 = vmatpush3.bf16.msra.mxu1 %v2688_v0  ;;  %2381 = vmatprep.mubr.msk.f32.mxu1 %vm2924_vm0, %v2925_v2  ;;  %v625_v0 = vld [vmem:[%s3115_s2 + $0x40] sm:$0xff] }
  0xea   :  { %2690 = vmatprep.subr.bf16.mxu1 %v2923_v1  ;;  %v2748_v5 = vpack.c.bf16 %v626_v4, %v625_v0 }
  0xed   :  { %2692 = vmatpush3.bf16.msra.mxu1 %v2691_v7  ;;  %v628_v7 = vld [vmem:[%s3115_s2 + $0x58] sm:$0xff] }
  0xee   :  { %2693 = vmatprep.subr.bf16.mxu1 %v2923_v1  ;;  %v2751_v8 = vpack.c.bf16 %v628_v7, %v627_v6  ;;  %v2022_v7 = vld [vmem:[#allocation2] ss:$0 sm:$0xff] }
  0xf1   :  { %2695 = vmatpush3.bf16.msra.mxu1 %v2694_v10  ;;  %v630_v10 = vld [vmem:[%s3115_s2 + $0x68] sm:$0xff] }
  0xf2   :  { %2696 = vmatprep.subr.bf16.mxu1 %v2923_v1  ;;  %v2754_v11 = vpack.c.bf16 %v630_v10, %v629_v9 }
  0xf5   :  { %2698 = vmatpush3.bf16.msra.mxu1 %v2697_v13  ;;  %v632_v13 = vld [vmem:[%s3115_s2 + $0x78] sm:$0xff]  ;;  %s2002_s2 = sld [smem:[%s3466_s0 + %s2942_s29]]  }
  0xf6   :  { %2699 = vmatprep.subr.bf16.mxu1 %v2923_v1  ;;  %v2757_v14 = vpack.c.bf16 %v632_v13, %v631_v12  ;;  %s2005_s29 = sld [smem:[%s3466_s0 + %s2947_s24]]  }
  0xf9   :  { %2701 = vmatpush3.bf16.msra.mxu1 %v2700_v16 }
  0xfa   :  { %2702 = vmatprep.subr.bf16.mxu1 %v2923_v1 }
  0xfb   :  { %v815_v37 = vld [vmem:[%s2002_s2] sm:$0x7] }
  0xfd   :  { %2704 = vmatpush3.bf16.msra.mxu1 %v2703_v19  ;;  %v2733_v19 = vpack.c.bf16 %v539_v18, %v538_v17  ;;  %v2076_v17 = vld [vmem:[%s2009_s23] ss:$0 sm:$0xff] }
  0xfe   :  { %2705 = vmatprep.subr.bf16.mxu1 %v2923_v1 }
  0xff   :  { %2734 = vmatpush3.bf16.msra.mxu0 %v2733_v19 }
 0x100   :  { %2759 = vmatprep.subr.bf16.mxu0 %v2923_v1 }
 0x101   :  { %2707 = vmatpush3.bf16.msra.mxu1 %v2706_v22  ;;  %v2021_v22 = vld [vmem:[%s1996_s18] ss:$0 sm:$0xff]  ;;  %s1986_s18 = sld [smem:[%s3466_s0 + %s2945_s15]]  }
 0x102   :  { %2708 = vmatprep.subr.bf16.mxu1 %v2923_v1 }
 0x105   :  { %2710 = vmatpush3.bf16.msra.mxu1 %v2709_v25 }
 0x106   :  { %2735 = vmatprep.subr.bf16.mxu1 %v2923_v1 }
 0x107   :  { %v3246_v10 = vld [vmem:[%s1986_s18] sm:$0xff] }
 0x167   :  { %v425_v50 = vpop.f32.mrb[2].mxu0 }
 0x168   :  { %v426_v51 = vadd.f32 %v2020_v47, %v425_v50  ;;  %v2348_v52 = vpop.f32.mrb[3].mxu0  ;;  %v2775_v47 = vpack.c.bf16 %v1047_v46, %v1046_v45  ;;  %v895_v50 = vld [vmem:[%s2004_s8] sm:$0x7]  ;;  %v2050_v45 = vld [vmem:[%s3164_s28 + $0x78] sm:$0xff] }
 0x169   :  { %v2040_v52 = vld [vmem:[%s3164_s28 + $0x38] sm:$0xff] }
 0x16a   :  { %v429_v54 = vmax.f32 %v426_v51, 0.0  ;;  %v69_v51 = vstv %s2000_s13 }
 0x16b   :  { %70 = vst [vmem:[#allocation3] sm:$0x1] %v69_v51  ;;  %v2053_v51 = vld [vmem:[%s3164_s28 + $0x90] sm:$0xff] }
 0x16c   :  { %2382 = vmatmul.mubr.f32.vlgmr.msra.gmra.mrb[2].mxu1 %v429_v54  ;;  %v2042_v54 = vld [vmem:[%s3164_s28 + $0x48] sm:$0xff] }
 0x16d   :  { %2737 = vmatpush3.bf16.msra.mxu1 %v2736_v53  ;;  %2451 = vmatprep.mubr.msk.f32.mxu1 %vm2924_vm0, %v2925_v2  ;;  %v2041_v53 = vld [vmem:[%s3164_s28 + $0x40] sm:$0xff] }
 0x16e   :  { %2738 = vmatprep.subr.bf16.mxu1 %v2923_v1  ;;  %v2778_v55 = vpack.c.bf16 %v2041_v53, %v2040_v52  ;;  %v2054_v52 = vld [vmem:[%s3164_s28 + $0x98] sm:$0xff] }
 0x16f   :  { %v2793_v53 = vpack.c.bf16 %v2054_v52, %v2053_v51 }
 0x171   :  { %2740 = vmatpush3.bf16.msra.mxu1 %v2739_v57  ;;  %v2781_v57 = vpack.c.bf16 %v2043_v56, %v2042_v54  ;;  %v2058_v54 = vld [vmem:[%s3164_s28 + $0xa8] sm:$0xff] }
 0x172   :  { %2741 = vmatprep.subr.bf16.mxu1 %v2923_v1  ;;  %v2023_v61 = vld [vmem:[#allocation3] ss:$0 sm:$0xff] }
 0x175   :  { %2743 = vmatpush3.bf16.msra.mxu1 %v2742_v60  ;;  %v2784_v60 = vpack.c.bf16 %v2045_v59, %v2044_v58 }
 0x176   :  { %2744 = vmatprep.subr.bf16.mxu1 %v2923_v1 }
 0x179   :  { %2746 = vmatpush3.bf16.msra.mxu1 %v2745_v63 }
 0x17a   :  { %2747 = vmatprep.subr.bf16.mxu1 %v2923_v1 }
 0x17d   :  { %2749 = vmatpush3.bf16.msra.mxu1 %v2748_v5 }
 0x17e   :  { %2750 = vmatprep.subr.bf16.mxu1 %v2923_v1 }
 0x181   :  { %2752 = vmatpush3.bf16.msra.mxu1 %v2751_v8 }
 0x182   :  { %2753 = vmatprep.subr.bf16.mxu1 %v2923_v1 }
 0x185   :  { %2755 = vmatpush3.bf16.msra.mxu1 %v2754_v11 }
 0x186   :  { %2756 = vmatprep.subr.bf16.mxu1 %v2923_v1 }
 0x189   :  { %2758 = vmatpush3.bf16.msra.mxu1 %v2757_v14 }
 0x18a   :  { %2471 = vmatprep.subr.mxu1 %v2925_v2 }
 0x1bb   :  { %v298_v15 = vpop.f32.mrb[0].mxu1 }
 0x1bc   :  { %v2313_v16 = vpop.f32.mrb[1].mxu1  ;;  %v299_v25 = vadd.f32 %v2016_v21, %v298_v15  ;;  %v2077_v15 = vld [vmem:[%s2009_s23 + $0x1] ss:$0 sm:$0xff]  ;;  %v2046_v21 = vld [vmem:[%s3164_s28 + $0x68] sm:$0x3] }
 0x1bd   :  { %v2078_v16 = vld [vmem:[%s2009_s23 + $0x2] ss:$0 sm:$0xff] }
 0x1be   :  { %v3175_v35 = vmax.f32 %v299_v25, 0.0 }
 0x23f   :  { %v519_v26 = vpop.f32.mrb[2].mxu1 }
 0x240   :  { %v520_v27 = vadd.f32 %v2021_v22, %v519_v26  ;;  %v2383_v28 = vpop.f32.mrb[3].mxu1  ;;  %v2079_v26 = vld [vmem:[%s2009_s23 + $0x3] ss:$0 sm:$0xff]  ;;  %s2007_s23 = sld [smem:[%s3466_s0 + %s2953_s19]]  }
 0x242   :  { %v523_v31 = vmax.f32 %v520_v27, 0.0 }
 0x244   :  { %2417 = vmatmul.mubr.f32.vlgmr.msra.gmra.mrb[4].mxu0 %v523_v31  ;;  %2452 = vmatmul.mubr.f32.vlgmr.msra.gmra.mrb[4].mxu1 %v523_v31 }
 0x245   :  { %2761 = vmatpush3.bf16.msra.mxu0 %v2760_v29  ;;  %2472 = vmatpush3.xpose.msk.msra.mxu1 %vm224_vm3, %v3175_v35 }
 0x246   :  { %2762 = vmatprep.subr.bf16.mxu0 %v2923_v1  ;;  %2473 = vmatprep.mubr.msk.f32.mxu1 %vm2924_vm0, %v2925_v2 }
 0x247   :  { %2768 = vmatprep.subr.bf16.mxu1 %v2923_v1  ;;  %2468 = vmatprep.mubr.msk.f32.mxu0 %vm2924_vm0, %v2925_v2 }
 0x248   :  { %2474 = vmatmul.mubr.msk.f32.vlgmr.msra.gmra.mrb[6].mxu1 %vm224_vm3, %v815_v37 }
 0x249   :  { %2764 = vmatpush3.bf16.msra.mxu0 %v2763_v36  ;;  %2770 = vmatpush3.bf16.msra.mxu1 %v2769_v38  ;;  %v896_v38 = vld [vmem:[%s2005_s29] sm:$0x7] }
 0x24a   :  { %2765 = vmatprep.subr.bf16.mxu0 %v2923_v1  ;;  %2771 = vmatprep.subr.bf16.mxu1 %v2923_v1 }
 0x24b   :  { %2495 = vmatprep.mubr.msk.f32.mxu1 %vm2924_vm0, %v2925_v2 }
 0x24d   :  { %2767 = vmatpush3.bf16.msra.mxu0 %v2766_v43  ;;  %2773 = vmatpush3.bf16.msra.mxu1 %v2772_v44  ;;  %v2049_v44 = vld [vmem:[%s3164_s28 + $0x70] sm:$0xff] }
 0x24e   :  { %2466 = vmatprep.subr.mxu0 %v2925_v2  ;;  %2774 = vmatprep.subr.bf16.mxu1 %v2923_v1 }
 0x251   :  { %2467 = vmatpush3.msk.msra.mxu0 %vm228_vm2, %v725_v48  ;;  %2776 = vmatpush3.bf16.msra.mxu1 %v2775_v47  ;;  %v2787_v47 = vpack.c.bf16 %v2050_v45, %v2049_v44  ;;  %v2051_v48 = vld [vmem:[%s3164_s28 + $0x80] sm:$0xff]  ;;  %v1506_v44 = vld [vmem:[%s3360_s16 + $0x28] sm:$0xff] }
 0x252   :  { %2469 = vmatmul.mubr.msk.f32.vlgmr.msra.gmra.mrb[6].mxu0 %vm224_vm3, %v3175_v35  ;;  %2493 = vmatprep.subr.mxu1 %v2925_v2 }
 0x253   :  { %2476 = vmatprep.subr.mxu0 %v2925_v2  ;;  %2478 = vmatprep.mubr.msk.f32.mxu0 %vm2924_vm0, %v2925_v2 }
 0x255   :  { %2494 = vmatpush3.msk.msra.mxu1 %vm228_vm2, %v1048_v49  ;;  %v2052_v49 = vld [vmem:[%s3164_s28 + $0x88] sm:$0xff] }
 0x256   :  { %2496 = vmatmul.mubr.msk.f32.vlgmr.msra.gmra.mrb[8].mxu1 %vm224_vm3, %v3175_v35  ;;  %2777 = vmatprep.subr.bf16.mxu1 %v2923_v1 }
 0x257   :  { %2512 = vmatprep.mubr.msk.f32.mxu1 %vm2924_vm0, %v2925_v2  ;;  %2779 = vmatpush3.bf16.msra.mxu1 %v2778_v55  ;;  %v2059_v55 = vld [vmem:[%s3164_s28 + $0xb0] sm:$0xff] }
 0x258   :  { %2477 = vmatpush3.xpose.msk.msra.mxu0 %vm224_vm3, %v3175_v35  ;;  %2780 = vmatprep.subr.bf16.mxu1 %v2923_v1  ;;  %v2796_v58 = vpack.c.bf16 %v2059_v55, %v2058_v54  ;;  %v2035_v54 = vld [vmem:[%s2007_s23 + $0x2] ss:$0 sm:$0xff] }
 0x259   :  { %2813 = vmatprep.subr.bf16.mxu0 %v2923_v1 }
 0x25b   :  { %2479 = vmatmul.mubr.msk.f32.vlgmr.msra.gmra.mrb[8].mxu0 %vm224_vm3, %v895_v50  ;;  %2782 = vmatpush3.bf16.msra.mxu1 %v2781_v57  ;;  %v2790_v50 = vpack.c.bf16 %v2052_v49, %v2051_v48  ;;  %v2055_v57 = vld [vmem:[%s3164_s28 + $0xa0] sm:$0x3] }
 0x25c   :  { %2580 = vmatprep.mubr.msk.f32.mxu0 %vm2924_vm0, %v2925_v2  ;;  %2783 = vmatprep.subr.bf16.mxu1 %v2923_v1 }
 0x25f   :  { %2785 = vmatpush3.bf16.msra.mxu1 %v2784_v60  ;;  %v2060_v60 = vld [vmem:[%s3164_s28 + $0xb8] sm:$0xff] }
 0x260   :  { %2510 = vmatprep.subr.mxu1 %v2925_v2 }
 0x263   :  { %2511 = vmatpush3.msk.msra.mxu1 %vm228_vm2, %v2046_v21 }
 0x264   :  { %2786 = vmatprep.subr.bf16.mxu1 %v2923_v1 }
 0x317   :  { %v613_v62 = vpop.f32.mrb[4].mxu0  ;;  %v706_v63 = vpop.f32.mrb[4].mxu1 }
 0x318   :  { %v3234_v0 = vadd.f32 %v2023_v61, %v706_v63  ;;  %v2418_v4 = vpop.f32.mrb[5].mxu0  ;;  %v2453_v5 = vpop.f32.mrb[5].mxu1  ;;  %v614_v12 = vadd.f32 %v2022_v7, %v613_v62  ;;  %v2061_v61 = vld [vmem:[%s3164_s28 + $0xc0] sm:$0xff]  ;;  %v2062_v63 = vld [vmem:[%s3164_s28 + $0xc8] sm:$0xff] }
 0x319   :  { %v2799_v62 = vpack.c.bf16 %v2061_v61, %v2060_v60  ;;  %v2063_v4 = vld [vmem:[%s3164_s28 + $0xd0] sm:$0xff]  ;;  %v2068_v7 = vld [vmem:[%s3164_s28 + $0xe8] sm:$0xff] }
 0x31a   :  { %v710_v6 = vmul.f32 1.442695, %v3234_v0  ;;  %v2802_v5 = vpack.c.bf16 %v2063_v4, %v2062_v63 }
 0x31b   :  { %v3274_v42 = vpop.f32.mrb[6].mxu1 }
 0x31c   :  { %2912 = vpow2.f32 %v710_v6  ;;  %v2475_v43 = vpop.f32.mrb[7].mxu1  ;;  %v2067_v6 = vld [vmem:[%s3164_s28 + $0xe0] sm:$0xff] }
 0x31d   :  { %v1505_v43 = vld [vmem:[%s3360_s16 + $0x20] sm:$0xff] }
 0x31e   :  { %v2820_v45 = vpack.c.bf16 %v1506_v44, %v1505_v43  ;;  %v2111_v43 = vld [vmem:[%s3360_s16 + $0xe8] sm:$0xff]  ;;  %v2107_v44 = vld [vmem:[%s3360_s16 + $0xd8] sm:$0x3] }
 0x325   :  { %v3244_v8 = vpop.f32.mrb[6].mxu0 }
 0x326   :  { %v2913_v9 = vpop.eup %2912  ;;  %v2470_v11 = vpop.f32.mrb[7].mxu0  ;;  %v803_v37 = vsel %vm802_vm4, %v3244_v8, -inf }
 0x327   :  { %v713_v13 = vmul.f32 %v2913_v9, %v3246_v10  ;;  %v2064_v11 = vld [vmem:[%s3164_s28 + $0xd8] sm:$0x3] }
 0x329   :  { %v3249_v14 = vadd.f32 %v713_v13, %v614_v12 }
 0x32b   :  { %997 = vperm.xlu1 %2911, %v3249_v14   ;;  %v982_v18 = vmul.f32 %v3249_v14, %v3249_v14  ;;  %v2031_v19 = vadd.f32 -0.33, %v3249_v14  ;;  %v2032_v20 = vadd.f32 -0.66, %v3249_v14  ;;  %v1478_v22 = vmul.f32 %v2077_v15, %v3249_v14  ;;  %v2069_v15 = vld [vmem:[%s3164_s28 + $0xf0] sm:$0xff] }
 0x32c   :  { %v1932_v41 = vsub.f32 %v2990_v3, %v3249_v14 }
 0x32d   :  { %v1485_v23 = vmul.f32 %v2078_v16, %v982_v18  ;;  %v984_v24 = vmax.f32 %v2031_v19, 0.0  ;;  %v987_v25 = vmax.f32 %v2032_v20, 0.0  ;;  %v1479_v27 = vadd.f32 %v2076_v17, %v1478_v22  ;;  %v2070_v16 = vld [vmem:[%s3164_s28 + $0xf8] sm:$0xff]  ;;  %v2072_v19 = vld [vmem:[%s3164_s28 + $0x108] sm:$0xff]  ;;  %v2073_v22 = vld [vmem:[%s3164_s28 + $0x110] sm:$0x3] }
 0x32e   :  { %v3267_v39 = vpop.f32.mrb[8].mxu0  ;;  %v2808_v17 = vpack.c.bf16 %v2070_v16, %v2069_v15 }
 0x32f   :  { %1009 = vperm.xlu1 %2911, %v982_v18   ;;  %v985_v28 = vmul.f32 %v984_v24, %v984_v24  ;;  %v988_v29 = vmul.f32 %v987_v25, %v987_v25  ;;  %v1486_v32 = vadd.f32 %v1485_v23, %v1479_v27  ;;  %v2480_v40 = vpop.f32.mrb[9].mxu0  ;;  %v2071_v18 = vld [vmem:[%s3164_s28 + $0x100] sm:$0xff]  ;;  %s2949_s28 = smov 29  }
 0x330   :  { %v2811_v20 = vpack.c.bf16 %v2072_v19, %v2071_v18  ;;  %s2012_s5 = sld [smem:[%s3466_s0 + %s2949_s28]]   ;;  %v2086_v18 = vld [vmem:[%s3360_s16 + $0x50] sm:$0xff] }
 0x331   :  { %1021 = vperm.xlu0 %2910, %v985_v28   ;;  %v1492_v31 = vmul.f32 %v2079_v26, %v985_v28  ;;  %v1499_v34 = vmul.f32 %v2080_v30, %v988_v29 }
 0x333   :  { %1033 = vperm.xlu1 %2911, %v988_v29   ;;  %v1493_v33 = vadd.f32 %v1492_v31, %v1486_v32 }
 0x335   :  { %v3260_v36 = vadd.f32 %v1499_v34, %v1493_v33  ;;  %v816_v34 = vld [vmem:[%s2003_s11] sm:$0x7] }
 0x350   :  { %804 = vmax.xlane.f32.xlu0 %v803_v37 }
 0x366   :  { %899 = vperm.xlu0 %2910, %v896_v38  }
 0x36a   :  { %1934 = vrot.lane.b32.xlu0 %v1932_v41, %s2921_s3  ;;  %s2948_s3 = smov 30   ;;  %v1504_v41 = vld [vmem:[%s3360_s16 + $0x18] sm:$0xff] }
 0x36b   :  { %s2013_s1 = sld [smem:[%s3466_s0 + %s2948_s3]]  }
 0x36e   :  { %1946 = vrot.lane.b32.xlu0 %v2913_v9, %s2945_s15 }
 0x372   :  { %1957 = vrot.lane.b32.xlu0 %v614_v12, %s2932_s10  ;;  %v2805_v12 = vpack.c.bf16 %v2068_v7, %v2067_v6  ;;  %v2083_v6 = vld [vmem:[%s3360_s16 + $0x38] sm:$0xff]  ;;  %v2084_v7 = vld [vmem:[%s3360_s16 + $0x40] sm:$0xff] }
 0x373   :  { %v2823_v15 = vpack.c.bf16 %v2084_v7, %v2083_v6 }
 0x3aa   :  { %v3278_v46 = vpop.permute.xlu1 %997 }
 0x3ab   :  { %v1123_v3 = vmul.f32 %v3278_v46, %v3175_v35 }
 0x3ad   :  { %2513 = vmatmul.mubr.msk.f32.vlgmr.msra.gmra.mrb[8].mxu1 %vm224_vm3, %v1123_v3 }
 0x3ae   :  { %2788 = vmatpush3.bf16.msra.mxu1 %v2787_v47  ;;  %2529 = vmatprep.mubr.msk.f32.mxu1 %vm2924_vm0, %v2925_v2  ;;  %v3293_v56 = vpop.permute.xlu1 %1009  ;;  %v1507_v47 = vld [vmem:[%s3360_s16 + $0x30] sm:$0x3] }
 0x3af   :  { %2789 = vmatprep.subr.bf16.mxu1 %v2923_v1  ;;  %v1209_v59 = vmul.f32 %v3293_v56, %v3175_v35 }
 0x3b0   :  { %v3312_v9 = vpop.permute.xlu0 %1021 }
 0x3b1   :  { %v1295_v13 = vmul.f32 %v3312_v9, %v3175_v35 }
 0x3b2   :  { %2791 = vmatpush3.bf16.msra.mxu1 %v2790_v50  ;;  %v3329_v21 = vpop.permute.xlu1 %1033 }
 0x3b3   :  { %2792 = vmatprep.subr.bf16.mxu1 %v2923_v1  ;;  %v1381_v23 = vmul.f32 %v3329_v21, %v3175_v35 }
 0x3b6   :  { %2794 = vmatpush3.bf16.msra.mxu1 %v2793_v53  ;;  %v2034_v53 = vld [vmem:[%s2007_s23 + $0x1] ss:$0 sm:$0xff] }
 0x3b7   :  { %2527 = vmatprep.subr.mxu1 %v2925_v2  ;;  %v1004_v55 = vmul.f32 %v2034_v53, %v3278_v46 }
 0x3ba   :  { %2528 = vmatpush3.msk.msra.mxu1 %vm228_vm2, %v2055_v57  ;;  %v2033_v57 = vld [vmem:[%s2007_s23] ss:$0 sm:$0xff] }
 0x3bb   :  { %2530 = vmatmul.mubr.msk.f32.vlgmr.msra.gmra.mrb[8].mxu1 %vm224_vm3, %v1209_v59  ;;  %2795 = vmatprep.subr.bf16.mxu1 %v2923_v1  ;;  %v1005_v59 = vadd.f32 %v2033_v57, %v1004_v55 }
 0x3bc   :  { %2797 = vmatpush3.bf16.msra.mxu1 %v2796_v58  ;;  %2546 = vmatprep.mubr.msk.f32.mxu1 %vm2924_vm0, %v2925_v2  ;;  %v2036_v58 = vld [vmem:[%s2007_s23 + $0x3] ss:$0 sm:$0xff] }
 0x3bd   :  { %2798 = vmatprep.subr.bf16.mxu1 %v2923_v1  ;;  %v1028_v61 = vmul.f32 %v2036_v58, %v3312_v9 }
 0x3c0   :  { %2800 = vmatpush3.bf16.msra.mxu1 %v2799_v62  ;;  %v2037_v62 = vld [vmem:[%s2007_s23 + $0x4] ss:$0 sm:$0xff] }
 0x3c1   :  { %2801 = vmatprep.subr.bf16.mxu1 %v2923_v1  ;;  %v1040_v63 = vmul.f32 %v2037_v62, %v3329_v21 }
 0x3c4   :  { %2803 = vmatpush3.bf16.msra.mxu1 %v2802_v5 }
 0x3c5   :  { %2544 = vmatprep.subr.mxu1 %v2925_v2 }
 0x3c8   :  { %2545 = vmatpush3.msk.msra.mxu1 %vm228_vm2, %v2064_v11 }
 0x3c9   :  { %2547 = vmatmul.mubr.msk.f32.vlgmr.msra.gmra.mrb[8].mxu1 %vm224_vm3, %v1295_v13  ;;  %2804 = vmatprep.subr.bf16.mxu1 %v2923_v1 }
 0x3ca   :  { %2806 = vmatpush3.bf16.msra.mxu1 %v2805_v12  ;;  %2563 = vmatprep.mubr.msk.f32.mxu1 %vm2924_vm0, %v2925_v2 }
 0x3cb   :  { %2807 = vmatprep.subr.bf16.mxu1 %v2923_v1 }
 0x3ce   :  { %2809 = vmatpush3.bf16.msra.mxu1 %v2808_v17  ;;  %v2085_v17 = vld [vmem:[%s3360_s16 + $0x48] sm:$0xff] }
 0x3cf   :  { %2810 = vmatprep.subr.bf16.mxu1 %v2923_v1  ;;  %v2826_v19 = vpack.c.bf16 %v2086_v18, %v2085_v17 }
 0x3d2   :  { %2812 = vmatpush3.bf16.msra.mxu1 %v2811_v20  ;;  %v2087_v20 = vld [vmem:[%s3360_s16 + $0x58] sm:$0xff] }
 0x3d3   :  { %2561 = vmatprep.subr.mxu1 %v2925_v2 }
 0x3d6   :  { %2562 = vmatpush3.msk.msra.mxu1 %vm228_vm2, %v2073_v22  ;;  %v2088_v22 = vld [vmem:[%s3360_s16 + $0x60] sm:$0xff] }
 0x3d7   :  { %2564 = vmatmul.mubr.msk.f32.vlgmr.msra.gmra.mrb[8].mxu1 %vm224_vm3, %v1381_v23  ;;  %v2829_v23 = vpack.c.bf16 %v2088_v22, %v2087_v20 }
 0x3dd   :  { %v805_v24 = vpop.xlane.xlu0 %804 }
 0x3de   :  { %v806_v25 = vsub.f32 %v3244_v8, %v805_v24  ;;  %v715_v8 = vmul.f32 -0.5, %v3246_v10  ;;  %v2092_v24 = vld [vmem:[%s3360_s16 + $0x70] sm:$0xff] }
 0x3e0   :  { %v807_v26 = vmul.f32 1.442695, %v806_v25  ;;  %v716_v33 = vmul.f32 %v715_v8, %v3246_v10  ;;  %v1502_v10 = vld [vmem:[%s3360_s16 + $0x8] sm:$0xff] }
 0x3e2   :  { %2914 = vpow2.f32 %v807_v26  ;;  %v717_v37 = vsub.f32 %v716_v33, %v3234_v0  ;;  %v1501_v0 = vld [vmem:[%s3360_s16] sm:$0xff]  ;;  %v2089_v26 = vld [vmem:[%s3360_s16 + $0x68] sm:$0x3]  ;;  %v2102_v33 = vld [vmem:[%s3360_s16 + $0xb0] sm:$0xff] }
 0x3e3   :  { %v2814_v40 = vpack.c.bf16 %v1502_v10, %v1501_v0  ;;  %v2103_v0 = vld [vmem:[%s3360_s16 + $0xb8] sm:$0xff]  ;;  %v2104_v10 = vld [vmem:[%s3360_s16 + $0xc0] sm:$0xff] }
 0x3e4   :  { %v2024_v38 = vadd.f32 -0.9189385, %v717_v37 }
 0x3e5   :  { %v900_v27 = vpop.permute.xlu0 %899  ;;  %2815 = vmatpush3.bf16.msra.mxu0 %v2814_v40  ;;  %v2106_v40 = vld [vmem:[%s3360_s16 + $0xd0] sm:$0xff] }
 0x3e6   :  { %v972_v28 = vadd.f32 %v3267_v39, %v900_v27  ;;  %v1503_v39 = vld [vmem:[%s3360_s16 + $0x10] sm:$0xff]  ;;  %2816 = vmatprep.subr.bf16.mxu0 %v2923_v1 }
 0x3e8   :  { %977 = vst.msk [vmem:[%s2013_s1] sm:$0x7] %vm975_vm5, %v972_v28  ;;  %v978_v35 = vsub.f32 0.0, %v972_v28 }
 0x3ea   :  { %v979_v29 = vmul.f32 1.442695, %v978_v35  ;;  %v2094_v35 = vld [vmem:[%s3360_s16 + $0x80] sm:$0xff] }
 0x3ec   :  { %v2915_v30 = vpop.eup %2914  ;;  %2916 = vpow2.f32 %v979_v29  ;;  %v2095_v29 = vld [vmem:[%s3360_s16 + $0x88] sm:$0xff] }
 0x3ed   :  { %v809_v31 = vsel %vm802_vm4, %v2915_v30, 0.0  ;;  %v2835_v30 = vpack.c.bf16 %v2095_v29, %v2094_v35 }
 0x3ee   :  { %810 = vadd.xlane.f32.xlu1 %v809_v31  ;;  %v2097_v31 = vld [vmem:[%s3360_s16 + $0x98] sm:$0xff] }
 0x3f6   :  { %v2917_v32 = vpop.eup %2916 }
 0x3f7   :  { %981 = vst.msk [vmem:[%s2012_s5] sm:$0x7] %vm975_vm5, %v2917_v32  ;;  %v2101_v32 = vld [vmem:[%s3360_s16 + $0xa8] sm:$0xff] }
 0x3f8   :  { %v2841_v37 = vpack.c.bf16 %v2102_v33, %v2101_v32 }
 0x3ff   :  { %819 = vperm.xlu1 %2911, %v816_v34   ;;  %v2098_v34 = vld [vmem:[%s3360_s16 + $0xa0] sm:$0x3] }
 0x403   :  { %1940 = vrot.lane.b32.xlu1 %v2024_v38, %s2922_s7  ;;  %s2952_s7 = smov 28  }
 0x404   :  { %s2011_s18 = sld [smem:[%s3466_s0 + %s2952_s7]]  }
 0x407   :  { %1951 = vrot.lane.b32.xlu1 %v3249_v14, %s2926_s14  ;;  %v2817_v14 = vpack.c.bf16 %v1504_v41, %v1503_v39  ;;  %v2844_v39 = vpack.c.bf16 %v2104_v10, %v2103_v0 }
 0x409   :  { %2818 = vmatpush3.bf16.msra.mxu0 %v2817_v14  ;;  %v2110_v14 = vld [vmem:[%s3360_s16 + $0xe0] sm:$0xff] }
 0x40a   :  { %2819 = vmatprep.subr.bf16.mxu0 %v2923_v1 }
 0x40d   :  { %2821 = vmatpush3.bf16.msra.mxu0 %v2820_v45  ;;  %v2850_v45 = vpack.c.bf16 %v2111_v43, %v2110_v14 }
 0x40e   :  { %2578 = vmatprep.subr.mxu0 %v2925_v2 }
 0x411   :  { %2579 = vmatpush3.msk.msra.mxu0 %vm228_vm2, %v1507_v47 }
 0x412   :  { %2822 = vmatprep.subr.bf16.mxu0 %v2923_v1 }
 0x47b   :  { %v811_v3 = vpop.xlane.xlu1 %810 }
 0x47c   :  { %2918 = vlog2.f32 %v811_v3  ;;  %v2112_v3 = vld [vmem:[%s3360_s16 + $0xf0] sm:$0xff] }
 0x47f   :  { %v820_v48 = vpop.permute.xlu1 %819 }
 0x480   :  { %v892_v49 = vadd.f32 %v3274_v42, %v820_v48  ;;  %v1016_v42 = vmul.f32 %v2035_v54, %v3293_v56  ;;  %v2113_v48 = vld [vmem:[%s3360_s16 + $0xf8] sm:$0xff]  ;;  %v1935_v54 = vpop.permute.xlu0 %1934 }
 0x482   :  { %976 = vst.msk [vmem:[%s2011_s18] sm:$0x7] %vm975_vm5, %v892_v49  ;;  %v1017_v60 = vadd.f32 %v1016_v42, %v1005_v59  ;;  %v2853_v49 = vpack.c.bf16 %v2113_v48, %v2112_v3 }
 0x483   :  { %v1941_v55 = vpop.permute.xlu1 %1940 }
 0x484   :  { %v1029_v4 = vadd.f32 %v1028_v61, %v1017_v60 }
 0x486   :  { %v2919_v50 = vpop.eup %2918  ;;  %v1041_v5 = vadd.f32 %v1040_v63, %v1029_v4 }
 0x487   :  { %v813_v51 = vmul.f32 0.6931472, %v2919_v50  ;;  %v2114_v50 = vld [vmem:[%s3360_s16 + $0x100] sm:$0xff] }
 0x489   :  { %v814_v52 = vsub.f32 %v806_v25, %v813_v51  ;;  %v2093_v25 = vld [vmem:[%s3360_s16 + $0x78] sm:$0xff]  ;;  %v2115_v51 = vld [vmem:[%s3360_s16 + $0x108] sm:$0xff] }
 0x48a   :  { %v2832_v27 = vpack.c.bf16 %v2093_v25, %v2092_v24 }
 0x48b   :  { %1963 = vrot.lane.b32.xlu1 %v814_v52, %s2929_s26  ;;  %v2116_v52 = vld [vmem:[%s3360_s16 + $0x110] sm:$0x3] }
 0x4aa   :  { %v1462_v11 = vpop.f32.mrb[8].mxu1 }
 0x4ab   :  { %v2858_v12 = vadd.f32 %v1462_v11, %v1041_v5  ;;  %v2565_v13 = vpop.f32.mrb[9].mxu1 }
 0x4ad   :  { %v3389_v16 = vmax.f32 %v2858_v12, 0.0 }
 0x4af   :  { %2581 = vmatmul.mubr.msk.f32.vlgmr.msra.gmra.mrb[10].mxu0 %vm224_vm3, %v3389_v16  ;;  %v1585_v28 = vmul.f32 %v3389_v16, %v3278_v46  ;;  %v2096_v46 = vld [vmem:[%s3360_s16 + $0x90] sm:$0xff]  ;;  %v1671_v38 = vmul.f32 %v3389_v16, %v3293_v56  ;;  %v2105_v56 = vld [vmem:[%s3360_s16 + $0xc8] sm:$0xff]  ;;  %v1757_v47 = vmul.f32 %v3389_v16, %v3312_v9  ;;  %v2856_v9 = vpack.c.bf16 %v2115_v51, %v2114_v50 }
 0x4b0   :  { %2824 = vmatpush3.bf16.msra.mxu0 %v2823_v15  ;;  %2597 = vmatprep.mubr.msk.f32.mxu0 %vm2924_vm0, %v2925_v2  ;;  %v2838_v8 = vpack.c.bf16 %v2097_v31, %v2096_v46  ;;  %v2847_v41 = vpack.c.bf16 %v2106_v40, %v2105_v56  ;;  %v1843_v53 = vmul.f32 %v3389_v16, %v3329_v21  ;;  %v1952_v21 = vpop.permute.xlu1 %1951 }
 0x4b1   :  { %2825 = vmatprep.subr.bf16.mxu0 %v2923_v1 }
 0x4b4   :  { %2827 = vmatpush3.bf16.msra.mxu0 %v2826_v19 }
 0x4b5   :  { %2828 = vmatprep.subr.bf16.mxu0 %v2923_v1 }
 0x4b8   :  { %2830 = vmatpush3.bf16.msra.mxu0 %v2829_v23 }
 0x4b9   :  { %2595 = vmatprep.subr.mxu0 %v2925_v2 }
 0x4bc   :  { %2596 = vmatpush3.msk.msra.mxu0 %vm228_vm2, %v2089_v26 }
 0x4bd   :  { %2598 = vmatmul.mubr.msk.f32.vlgmr.msra.gmra.mrb[10].mxu0 %vm224_vm3, %v1585_v28  ;;  %2831 = vmatprep.subr.bf16.mxu0 %v2923_v1 }
 0x4be   :  { %2833 = vmatpush3.bf16.msra.mxu0 %v2832_v27  ;;  %2614 = vmatprep.mubr.msk.f32.mxu0 %vm2924_vm0, %v2925_v2 }
 0x4bf   :  { %2834 = vmatprep.subr.bf16.mxu0 %v2923_v1 }
 0x4c2   :  { %2836 = vmatpush3.bf16.msra.mxu0 %v2835_v30 }
 0x4c3   :  { %2837 = vmatprep.subr.bf16.mxu0 %v2923_v1 }
 0x4c6   :  { %2839 = vmatpush3.bf16.msra.mxu0 %v2838_v8 }
 0x4c7   :  { %2612 = vmatprep.subr.mxu0 %v2925_v2 }
 0x4ca   :  { %2613 = vmatpush3.msk.msra.mxu0 %vm228_vm2, %v2098_v34 }
 0x4cb   :  { %2615 = vmatmul.mubr.msk.f32.vlgmr.msra.gmra.mrb[10].mxu0 %vm224_vm3, %v1671_v38  ;;  %2840 = vmatprep.subr.bf16.mxu0 %v2923_v1 }
 0x4cc   :  { %2842 = vmatpush3.bf16.msra.mxu0 %v2841_v37  ;;  %2631 = vmatprep.mubr.msk.f32.mxu0 %vm2924_vm0, %v2925_v2 }
 0x4cd   :  { %2843 = vmatprep.subr.bf16.mxu0 %v2923_v1 }
 0x4d0   :  { %2845 = vmatpush3.bf16.msra.mxu0 %v2844_v39 }
 0x4d1   :  { %2846 = vmatprep.subr.bf16.mxu0 %v2923_v1 }
 0x4d4   :  { %2848 = vmatpush3.bf16.msra.mxu0 %v2847_v41 }
 0x4d5   :  { %2629 = vmatprep.subr.mxu0 %v2925_v2 }
 0x4d8   :  { %2630 = vmatpush3.msk.msra.mxu0 %vm228_vm2, %v2107_v44 }
 0x4d9   :  { %2632 = vmatmul.mubr.msk.f32.vlgmr.msra.gmra.mrb[10].mxu0 %vm224_vm3, %v1757_v47  ;;  %2849 = vmatprep.subr.bf16.mxu0 %v2923_v1 }
 0x4da   :  { %2851 = vmatpush3.bf16.msra.mxu0 %v2850_v45  ;;  %2648 = vmatprep.mubr.msk.f32.mxu0 %vm2924_vm0, %v2925_v2 }
 0x4db   :  { %2852 = vmatprep.subr.bf16.mxu0 %v2923_v1 }
 0x4de   :  { %2854 = vmatpush3.bf16.msra.mxu0 %v2853_v49 }
 0x4df   :  { %2855 = vmatprep.subr.bf16.mxu0 %v2923_v1  ;;  %v1947_v1 = vpop.permute.xlu0 %1946 }
 0x4e2   :  { %2857 = vmatpush3.bf16.msra.mxu0 %v2856_v9 }
 0x4e3   :  { %2646 = vmatprep.subr.mxu0 %v2925_v2  ;;  %v1958_v58 = vpop.permute.xlu0 %1957 }
 0x4e6   :  { %2647 = vmatpush3.msk.msra.mxu0 %vm228_vm2, %v2116_v52 }
 0x4e7   :  { %2649 = vmatmul.mubr.msk.f32.vlgmr.msra.gmra.mrb[10].mxu0 %vm224_vm3, %v1843_v53 }
 0x4fd   :  { %v1964_v59 = vpop.permute.xlu1 %1963 }
 0x5ba   :  { %v1924_v57 = vpop.f32.mrb[10].mxu0 }
 0x5bb   :  { %v2859_v42 = vadd.f32 %v1924_v57, %v3260_v36  ;;  %v2650_v2 = vpop.f32.mrb[11].mxu0 }
 0x5bd   :  { %1931 = vst.msk [vmem:[%s2983_s21] sm:$0xff] %vm1930_vm6, %v2859_v42 }
 0x5be   :  { %1938 = vst.msk [vmem:[%s2983_s21] sm:$0xff] %vm1937_vm7, %v1935_v54 }
 0x5bf   :  { %1944 = vst.msk [vmem:[%s2983_s21] sm:$0xff] %vm1943_vm8, %v1941_v55 }
 0x5c0   :  { %1950 = vst.msk [vmem:[%s2983_s21] sm:$0xff] %vm1949_vm9, %v1947_v1 }
 0x5c1   :  { %1955 = vst.msk [vmem:[%s2983_s21] sm:$0xff] %vm1954_vm10, %v1952_v21 }
 0x5c2   :  { %1961 = vst.msk [vmem:[%s2983_s21] sm:$0xff] %vm1960_vm11, %v1958_v58 }
 0x5c3   :  { %1967 = vst.msk [vmem:[%s2983_s21] sm:$0xff] %vm1966_vm12, %v1964_v59 }

</bundles_post_ra>
